<compile_context>
chip_gen: v7x
topology: tpu7x:2x2x1
jax: 0.10.0
libtpu: 0.0.40
codegen_flags: <defaults>
</compile_context>

<pallas_src>
import functools
import math

import numpy as np
import jax
import jax.numpy as jnp
from jax import lax
from jax.experimental import pallas as pl
from jax.experimental.pallas import tpu as pltpu

CONV_CHANNELS = 64   # Conv1d(_, 64, ...) is hard-coded in the module
ATTN_HIDDEN = 125    # Attention(hidden_dim, 125) is hard-coded in the module
_LANE = 128


# ---------------------------------------------------------------------------
# Structural 0/1 matrices (built once, at trace time, with numpy -> constants).
# Row axis is the flattened (Bt * L) "batch * sequence" axis, row = b * L + l.
# ---------------------------------------------------------------------------
def _np_shift_mats(n_rows, seg_len):
    """Per-sample shift-by-one selection: (S_prev @ h)[i] = h[i-1] within a
    sample (zero at each sample's first row), (S_next @ h)[i] = h[i+1] (zero at
    each sample's last row).  Implements Conv1d padding=1 exactly."""
    r = np.arange(n_rows)[:, None]
    c = np.arange(n_rows)[None, :]
    prev = ((c == r - 1) & (r % seg_len != 0)).astype(np.float32)
    nxt = ((c == r + 1) & (r % seg_len != seg_len - 1)).astype(np.float32)
    return prev, nxt


def _np_pool_mats(n_rows):
    """Even / odd row selection for MaxPool1d(2,2) on the flattened axis.  Every
    per-sample length is even, so pooling pairs never straddle a sample boundary
    and the plain even/odd selection is exact per sample."""
    half = n_rows // 2
    r = np.arange(half)[:, None]
    c = np.arange(n_rows)[None, :]
    even = (c == 2 * r).astype(np.float32)
    odd = (c == 2 * r + 1).astype(np.float32)
    return even, odd


def _np_segment_mat(batch, seg_len):
    """(Bt, Bt*seg_len) 0/1 matrix; row b sums the rows belonging to sample b."""
    r = np.arange(batch)[:, None]
    c = np.arange(batch * seg_len)[None, :]
    return (c // seg_len == r).astype(np.float32)


# ---------------------------------------------------------------------------
# Kernel: one (token, batch-tile) pair per grid step, everything stays in VMEM.
# ---------------------------------------------------------------------------
def _cnn_attention_kernel(*refs, num_conv_layers, compute_dtype):
    x_ref = refs[0]
    o_ref = refs[-1]
    rest = refs[1:-1]
    n_struct = 4 * num_conv_layers + 1
    struct = rest[:n_struct]
    params = rest[n_struct:]
    conv_refs = [(params[2 * i], params[2 * i + 1]) for i in range(num_conv_layers)]
    (w_in_ref, b_in_ref, w_out_ref, b_out_ref,
     w_f_ref, b_f_ref) = params[2 * num_conv_layers:]

    f32 = jnp.float32
    cd = compute_dtype

    h = x_ref[0].astype(f32)                       # (Bt*L, C_in), rows = b*L + l
    for layer in range(num_conv_layers):
        s_prev = struct[4 * layer][...]            # (N, N) in compute_dtype
        s_next = struct[4 * layer + 1][...]
        even = struct[4 * layer + 2][...]          # (N/2, N) f32 (exact selection)
        odd = struct[4 * layer + 3][...]
        w_ref, b_ref = conv_refs[layer]

        hc = h.astype(cd)
        # Per-sample shift-by-one (Conv1d padding=1) via exact 0/1 selection.
        h_prev = jnp.dot(s_prev, hc, preferred_element_type=cd)
        h_next = jnp.dot(s_next, hc, preferred_element_type=cd)
        # Conv1d(k=3): three tap matmuls with M = Bt*L rows, f32 accumulation.
        y = (jnp.dot(h_prev, w_ref[0, 0], preferred_element_type=f32)
             + jnp.dot(hc, w_ref[0, 1], preferred_element_type=f32)
             + jnp.dot(h_next, w_ref[0, 2], preferred_element_type=f32)
             + b_ref[0].astype(f32))               # (Bt*L, 64)
        y = jnp.maximum(y, 0.0)                    # ReLU (f32 VPU)
        # MaxPool1d(2, 2): exact even/odd row selection + element-wise max (f32).
        h = jnp.maximum(jnp.dot(even, y, preferred_element_type=f32),
                        jnp.dot(odd, y, preferred_element_type=f32))

    seg = struct[4 * num_conv_layers][...]         # (Bt, Bt*L_final) f32

    # Attention over each sample's pooled sequence (softmax over dim=1 in torch).
    hc = h.astype(cd)
    energy = jnp.tanh(jnp.dot(hc, w_in_ref[0], preferred_element_type=f32)
                      + b_in_ref[0].astype(f32))                     # (Bt*Lf, 128)
    # linear_out has a single output -> keep it off the MXU:
    # VPU multiply against the lane-dense weight row + XLU lane reduce.
    logits = (jnp.sum(energy * w_out_ref[0], axis=-1, keepdims=True)
              + b_out_ref[0].astype(f32))                            # (Bt*Lf, 1)
    # Softmax is invariant to any per-sample constant; a single tile-wide max keeps
    # the exponent stable and is mathematically identical per sample.
    m = jnp.max(logits, axis=0, keepdims=True)
    e = jnp.exp(logits - m)                                          # (Bt*Lf, 1)
    num = jnp.dot(seg, e * h, preferred_element_type=f32)            # (Bt, 64)
    den = jnp.dot(seg, e, preferred_element_type=f32)                # (Bt, 1)
    ctx = num * (1.0 / den)                                          # (Bt, 64)

    out = (jnp.dot(ctx.astype(cd), w_f_ref[0], preferred_element_type=f32)
           + b_f_ref[0].astype(f32))                                 # (Bt, out)
    o_ref[0, 0] = out.astype(o_ref.dtype)


# ---------------------------------------------------------------------------
# One-time parameter prep (outside the hot path).
# ---------------------------------------------------------------------------
def prepare_params(params, *, compute_dtype=jnp.float32):
    """Pad the attention hidden dim 125 -> 128 (exact zero pad), turn linear_out
    into a lane-dense row, and cast MXU weight operands to compute_dtype
    (f32 = bit-faithful; jnp.bfloat16 = full-rate MXU on v6e/v7x).  Biases and
    the VPU-side linear_out row stay f32."""
    cd = compute_dtype
    attn_h = params["attn_w_in"].shape[2]
    pad = (-attn_h) % _LANE
    w_out_row = jnp.transpose(
        jnp.pad(params["attn_w_out"], ((0, 0), (0, pad), (0, 0))), (0, 2, 1))
    return {
        "conv_w": [w.astype(cd) for w in params["conv_w"]],
        "conv_b": list(params["conv_b"]),
        "attn_w_in": jnp.pad(params["attn_w_in"],
                             ((0, 0), (0, 0), (0, pad))).astype(cd),
        "attn_b_in": jnp.pad(params["attn_b_in"], ((0, 0), (0, 0), (0, pad))),
        "attn_w_out_row": w_out_row.astype(jnp.float32),   # used on the VPU
        "attn_b_out": params["attn_b_out"],
        "fin_w": params["fin_w"].astype(cd),
        "fin_b": params["fin_b"],
        "compute_dtype": cd,
        "num_conv_layers": len(params["conv_w"]),
    }


# ---------------------------------------------------------------------------
# Forward wrapper: single fused pallas_call, grid = (width, cdiv(B, Bt)).
# ---------------------------------------------------------------------------
def cnn_attention_tokenizer_forward(x, prepped, *, block_b=None):
    """x: (B, C_in, L) -> (1, width*B, output_size)."""
    B, c_in, L = x.shape
    cd = prepped["compute_dtype"]
    n_layers = prepped["num_conv_layers"]
    width = prepped["fin_w"].shape[0]
    out_size = prepped["fin_w"].shape[2]
    assert L % (2 ** n_layers) == 0, "seq_len must be divisible by 2**num_conv_layers"

    bt = B if block_b is None else min(block_b, B)
    assert B % bt == 0, "block_b must divide the batch size"
    n_bt = B // bt

    # Channels-last and batch folded into the row (sublane) axis once, in XLA land.
    x_rows = jnp.transpose(x, (0, 2, 1)).reshape(n_bt, bt * L, c_in)

    # Structural 0/1 matrices: numpy -> trace-time constants, hoisted out of kernel.
    struct = []
    seg_len = L
    for _ in range(n_layers):
        prev, nxt = _np_shift_mats(bt * seg_len, seg_len)
        even, odd = _np_pool_mats(bt * seg_len)
        struct += [jnp.asarray(prev, dtype=cd), jnp.asarray(nxt, dtype=cd),
                   jnp.asarray(even), jnp.asarray(odd)]
        seg_len //= 2
    struct.append(jnp.asarray(_np_segment_mat(bt, seg_len)))

    inputs = [x_rows] + struct
    in_specs = [pl.BlockSpec((1, bt * L, c_in), lambda t, bi: (bi, 0, 0))]
    in_specs += [pl.BlockSpec(m.shape, lambda t, bi: (0, 0)) for m in struct]

    for layer in range(n_layers):
        w = prepped["conv_w"][layer]               # (width, 3, C_in_l, 64)
        b = prepped["conv_b"][layer]               # (width, 1, 64)
        inputs += [w, b]
        in_specs += [
            pl.BlockSpec((1,) + w.shape[1:], lambda t, bi: (t, 0, 0, 0)),
            pl.BlockSpec((1,) + b.shape[1:], lambda t, bi: (t, 0, 0)),
        ]

    for name in ("attn_w_in", "attn_b_in", "attn_w_out_row", "attn_b_out",
                 "fin_w", "fin_b"):
        arr = prepped[name]
        inputs.append(arr)
        in_specs.append(pl.BlockSpec((1,) + arr.shape[1:],
                                     lambda t, bi: (t, 0, 0)))

    # Dense (Bt, out_size) output slab per grid step (lane-dense when out_size%128==0).
    out_spec = pl.BlockSpec((1, 1, bt, out_size), lambda t, bi: (t, bi, 0, 0))

    kernel = functools.partial(
        _cnn_attention_kernel,
        num_conv_layers=n_layers,
        compute_dtype=cd,
    )

    out = pl.pallas_call(
        kernel,
        out_shape=jax.ShapeDtypeStruct((width, n_bt, bt, out_size), x.dtype),
        grid=(width, n_bt),
        in_specs=in_specs,
        out_specs=out_spec,
        compiler_params=pltpu.CompilerParams(
            dimension_semantics=("parallel", "parallel"),
            # Keep comfortably under v7x's 64 MiB physical VMEM; raise for big tiles.
            vmem_limit_bytes=32 * 1024 * 1024,
        ),
    )(*inputs)

    # torch.cat(outputs, dim=-2) over tokens, then torch.stack([...]).
    return out.reshape(width * B, out_size)[None]


# ---------------------------------------------------------------------------
# Parameter construction + pure-JAX reference (mirrors the PyTorch module).
# ---------------------------------------------------------------------------
def make_cnn_attention_params(key, *, width, input_channels, num_conv_layers,
                              output_size, dtype=jnp.float32):
    """Same layer structure / uniform fan-in init as the PyTorch module.
    Linear weights stored as (in, out) = torch W.T; conv weights stored as
    (tap k, in_channel, out_channel) = torch weight.permute(2, 1, 0)."""
    def uni(k, shape, fan_in):
        bound = 1.0 / math.sqrt(fan_in)
        return jax.random.uniform(k, shape, dtype, -bound, bound)

    params = {"conv_w": [], "conv_b": []}
    in_ch = input_channels
    for _ in range(num_conv_layers):
        key, kw, kb = jax.random.split(key, 3)
        fan_in = in_ch * 3
        params["conv_w"].append(uni(kw, (width, 3, in_ch, CONV_CHANNELS), fan_in))
        params["conv_b"].append(uni(kb, (width, 1, CONV_CHANNELS), fan_in))
        in_ch = CONV_CHANNELS

    key, k1, k2, k3, k4, k5, k6 = jax.random.split(key, 7)
    params["attn_w_in"] = uni(k1, (width, CONV_CHANNELS, ATTN_HIDDEN), CONV_CHANNELS)
    params["attn_b_in"] = uni(k2, (width, 1, ATTN_HIDDEN), CONV_CHANNELS)
    params["attn_w_out"] = uni(k3, (width, ATTN_HIDDEN, 1), ATTN_HIDDEN)
    params["attn_b_out"] = uni(k4, (width, 1, 1), ATTN_HIDDEN)
    params["fin_w"] = uni(k5, (width, CONV_CHANNELS, output_size), CONV_CHANNELS)
    params["fin_b"] = uni(k6, (width, 1, output_size), CONV_CHANNELS)
    return params


def cnn_attention_tokenizer_reference(x, params):
    """Plain-JAX reference mirroring the PyTorch forward (f32, HIGHEST precision)."""
    hi = lax.Precision.HIGHEST
    width = params["fin_w"].shape[0]
    num_conv_layers = len(params["conv_w"])
    outs = []
    for t in range(width):
        h = x.astype(jnp.float32)                     # (B, C_in, L)
        for layer in range(num_conv_layers):
            w_tap = params["conv_w"][layer][t]        # (3, C_in, 64)
            w_conv = jnp.transpose(w_tap, (2, 1, 0))  # (64, C_in, 3) = torch layout
            bias = params["conv_b"][layer][t][0]      # (64,)
            h = lax.conv_general_dilated(
                h, w_conv, window_strides=(1,), padding=((1, 1),),
                dimension_numbers=("NCH", "OIH", "NCH"), precision=hi)
            h = jnp.maximum(h + bias[None, :, None], 0.0)
            h = lax.reduce_window(h, -jnp.inf, lax.max,
                                  (1, 1, 2), (1, 1, 2), "VALID")
        h = jnp.transpose(h, (0, 2, 1))               # (B, L', 64)
        energy = jnp.tanh(jnp.matmul(h, params["attn_w_in"][t], precision=hi)
                          + params["attn_b_in"][t])
        logits = (jnp.matmul(energy, params["attn_w_out"][t], precision=hi)
                  + params["attn_b_out"][t])
        scores = jax.nn.softmax(logits, axis=1)
        ctx = jnp.sum(scores * h, axis=1)             # (B, 64)
        outs.append(jnp.matmul(ctx, params["fin_w"][t], precision=hi)
                    + params["fin_b"][t])             # (B, out)
    return jnp.concatenate(outs, axis=0)[None]        # (1, width*B, out)


if __name__ == "__main__":
    # Small shapes consistent with the module: x is (batch, channels, seq).
    batch = 2
    input_channels = 4
    seq_len = 16
    width = 2
    num_conv_layers = 2          # seq 16 -> 8 -> 4 after the two MaxPool1d(2, 2)
    output_size = 128            # lane-dense output (multiple of 128)

    key = jax.random.PRNGKey(0)
    kx, kp = jax.random.split(key)
    x = jax.random.normal(kx, (batch, input_channels, seq_len), jnp.float32)
    params = make_cnn_attention_params(
        kp, width=width, input_channels=input_channels,
        num_conv_layers=num_conv_layers, output_size=output_size)

    # compute_dtype=f32 keeps the kernel bit-faithful; pass jnp.bfloat16 on v6e/v7x.
    prepped = prepare_params(params, compute_dtype=jnp.float32)
    out = cnn_attention_tokenizer_forward(x, prepped)
    out = jax.block_until_ready(out)

    ref = cnn_attention_tokenizer_reference(x, params)
    assert out.shape == (1, width * batch, output_size), out.shape
    max_err = float(jnp.max(jnp.abs(out - ref)))
    assert jnp.allclose(out, ref, atol=1e-3, rtol=1e-3), max_err

    print("KERNEL_OK")
</pallas_src>

<mosaic_0001>
module attributes {stable_mosaic.version = 11 : i64} {
  func.func @_cnn_attention_kernel(%arg0: i32, %arg1: i32, %arg2: memref<1x32x4xf32, #tpu.memory_space<vmem>>, %arg3: memref<32x32xf32, #tpu.memory_space<vmem>>, %arg4: memref<32x32xf32, #tpu.memory_space<vmem>>, %arg5: memref<16x32xf32, #tpu.memory_space<vmem>>, %arg6: memref<16x32xf32, #tpu.memory_space<vmem>>, %arg7: memref<16x16xf32, #tpu.memory_space<vmem>>, %arg8: memref<16x16xf32, #tpu.memory_space<vmem>>, %arg9: memref<8x16xf32, #tpu.memory_space<vmem>>, %arg10: memref<8x16xf32, #tpu.memory_space<vmem>>, %arg11: memref<2x8xf32, #tpu.memory_space<vmem>>, %arg12: memref<1x3x4x64xf32, #tpu.memory_space<vmem>>, %arg13: memref<1x1x64xf32, #tpu.memory_space<vmem>>, %arg14: memref<1x3x64x64xf32, #tpu.memory_space<vmem>>, %arg15: memref<1x1x64xf32, #tpu.memory_space<vmem>>, %arg16: memref<1x64x128xf32, #tpu.memory_space<vmem>>, %arg17: memref<1x1x128xf32, #tpu.memory_space<vmem>>, %arg18: memref<1x1x128xf32, #tpu.memory_space<vmem>>, %arg19: memref<1x1x1xf32, #tpu.memory_space<vmem>>, %arg20: memref<1x64x128xf32, #tpu.memory_space<vmem>>, %arg21: memref<1x1x128xf32, #tpu.memory_space<vmem>>, %arg22: memref<1x1x2x128xf32, #tpu.memory_space<vmem>>) attributes {dimension_semantics = [#tpu.dimension_semantics<parallel>, #tpu.dimension_semantics<parallel>], iteration_bounds = array<i64: 2, 1>, scalar_prefetch = 0 : i64, scratch_operands = 0 : i64, tpu.core_type = #tpu.core_type<tc>, window_params = [{transform_indices = @transform_0, window_bounds = array<i64: 1, 32, 4>}, {pipeline_mode = #tpu.pipeline_mode<synchronous>, transform_indices = @transform_1, window_bounds = array<i64: 32, 32>}, {pipeline_mode = #tpu.pipeline_mode<synchronous>, transform_indices = @transform_2, window_bounds = array<i64: 32, 32>}, {pipeline_mode = #tpu.pipeline_mode<synchronous>, transform_indices = @transform_3, window_bounds = array<i64: 16, 32>}, {pipeline_mode = #tpu.pipeline_mode<synchronous>, transform_indices = @transform_4, window_bounds = array<i64: 16, 32>}, {pipeline_mode = #tpu.pipeline_mode<synchronous>, transform_indices = @transform_5, window_bounds = array<i64: 16, 16>}, {pipeline_mode = #tpu.pipeline_mode<synchronous>, transform_indices = @transform_6, window_bounds = array<i64: 16, 16>}, {pipeline_mode = #tpu.pipeline_mode<synchronous>, transform_indices = @transform_7, window_bounds = array<i64: 8, 16>}, {pipeline_mode = #tpu.pipeline_mode<synchronous>, transform_indices = @transform_8, window_bounds = array<i64: 8, 16>}, {pipeline_mode = #tpu.pipeline_mode<synchronous>, transform_indices = @transform_9, window_bounds = array<i64: 2, 8>}, {transform_indices = @transform_10, window_bounds = array<i64: 1, 3, 4, 64>}, {transform_indices = @transform_11, window_bounds = array<i64: 1, 1, 64>}, {transform_indices = @transform_12, window_bounds = array<i64: 1, 3, 64, 64>}, {transform_indices = @transform_13, window_bounds = array<i64: 1, 1, 64>}, {transform_indices = @transform_14, window_bounds = array<i64: 1, 64, 128>}, {transform_indices = @transform_15, window_bounds = array<i64: 1, 1, 128>}, {transform_indices = @transform_16, window_bounds = array<i64: 1, 1, 128>}, {transform_indices = @transform_17, window_bounds = array<i64: 1, 1, 1>}, {transform_indices = @transform_18, window_bounds = array<i64: 1, 64, 128>}, {transform_indices = @transform_19, window_bounds = array<i64: 1, 1, 128>}, {transform_indices = @transform_20, window_bounds = array<i64: 1, 1, 2, 128>}]} {
    %c0 = arith.constant 0 : index
    %c0_0 = arith.constant 0 : index
    %c0_1 = arith.constant 0 : index
    %0 = vector.load %arg2[%c0, %c0_0, %c0_1] : memref<1x32x4xf32, #tpu.memory_space<vmem>>, vector<1x32x4xf32>
    %1 = vector.shape_cast %0 : vector<1x32x4xf32> to vector<32x4xf32>
    %c0_2 = arith.constant 0 : index
    %c0_3 = arith.constant 0 : index
    %2 = vector.load %arg3[%c0_2, %c0_3] : memref<32x32xf32, #tpu.memory_space<vmem>>, vector<32x32xf32>
    %c0_4 = arith.constant 0 : index
    %c0_5 = arith.constant 0 : index
    %3 = vector.load %arg4[%c0_4, %c0_5] : memref<32x32xf32, #tpu.memory_space<vmem>>, vector<32x32xf32>
    %c0_6 = arith.constant 0 : index
    %c0_7 = arith.constant 0 : index
    %4 = vector.load %arg5[%c0_6, %c0_7] : memref<16x32xf32, #tpu.memory_space<vmem>>, vector<16x32xf32>
    %c0_8 = arith.constant 0 : index
    %c0_9 = arith.constant 0 : index
    %5 = vector.load %arg6[%c0_8, %c0_9] : memref<16x32xf32, #tpu.memory_space<vmem>>, vector<16x32xf32>
    %cst = arith.constant dense<0.000000e+00> : vector<32x4xf32>
    %6 = tpu.matmul %2, %1, %cst {dimension_numbers = #tpu.dot_dimension_numbers<[1], [0], [0], [1], [0, 0, 1, 1], [], []>} : vector<32x32xf32>, vector<32x4xf32>, vector<32x4xf32> -> vector<32x4xf32>
    %cst_10 = arith.constant dense<0.000000e+00> : vector<32x4xf32>
    %7 = tpu.matmul %3, %1, %cst_10 {dimension_numbers = #tpu.dot_dimension_numbers<[1], [0], [0], [1], [0, 0, 1, 1], [], []>} : vector<32x32xf32>, vector<32x4xf32>, vector<32x4xf32> -> vector<32x4xf32>
    %c0_11 = arith.constant 0 : index
    %c0_12 = arith.constant 0 : index
    %c0_13 = arith.constant 0 : index
    %c0_14 = arith.constant 0 : index
    %8 = vector.load %arg12[%c0_11, %c0_12, %c0_13, %c0_14] : memref<1x3x4x64xf32, #tpu.memory_space<vmem>>, vector<1x1x4x64xf32>
    %9 = vector.shape_cast %8 : vector<1x1x4x64xf32> to vector<4x64xf32>
    %cst_15 = arith.constant dense<0.000000e+00> : vector<32x64xf32>
    %10 = tpu.matmul %6, %9, %cst_15 {dimension_numbers = #tpu.dot_dimension_numbers<[1], [0], [0], [1], [0, 0, 1, 1], [], []>} : vector<32x4xf32>, vector<4x64xf32>, vector<32x64xf32> -> vector<32x64xf32>
    %c0_16 = arith.constant 0 : index
    %c1 = arith.constant 1 : index
    %c0_17 = arith.constant 0 : index
    %c0_18 = arith.constant 0 : index
    %11 = vector.load %arg12[%c0_16, %c1, %c0_17, %c0_18] : memref<1x3x4x64xf32, #tpu.memory_space<vmem>>, vector<1x1x4x64xf32>
    %12 = vector.shape_cast %11 : vector<1x1x4x64xf32> to vector<4x64xf32>
    %cst_19 = arith.constant dense<0.000000e+00> : vector<32x64xf32>
    %13 = tpu.matmul %1, %12, %cst_19 {dimension_numbers = #tpu.dot_dimension_numbers<[1], [0], [0], [1], [0, 0, 1, 1], [], []>} : vector<32x4xf32>, vector<4x64xf32>, vector<32x64xf32> -> vector<32x64xf32>
    %14 = arith.addf %10, %13 : vector<32x64xf32>
    %c0_20 = arith.constant 0 : index
    %c2 = arith.constant 2 : index
    %c0_21 = arith.constant 0 : index
    %c0_22 = arith.constant 0 : index
    %15 = vector.load %arg12[%c0_20, %c2, %c0_21, %c0_22] : memref<1x3x4x64xf32, #tpu.memory_space<vmem>>, vector<1x1x4x64xf32>
    %16 = vector.shape_cast %15 : vector<1x1x4x64xf32> to vector<4x64xf32>
    %cst_23 = arith.constant dense<0.000000e+00> : vector<32x64xf32>
    %17 = tpu.matmul %7, %16, %cst_23 {dimension_numbers = #tpu.dot_dimension_numbers<[1], [0], [0], [1], [0, 0, 1, 1], [], []>} : vector<32x4xf32>, vector<4x64xf32>, vector<32x64xf32> -> vector<32x64xf32>
    %18 = arith.addf %14, %17 : vector<32x64xf32>
    %c0_24 = arith.constant 0 : index
    %c0_25 = arith.constant 0 : index
    %c0_26 = arith.constant 0 : index
    %19 = vector.load %arg13[%c0_24, %c0_25, %c0_26] : memref<1x1x64xf32, #tpu.memory_space<vmem>>, vector<1x1x64xf32>
    %20 = vector.shape_cast %19 : vector<1x1x64xf32> to vector<1x64xf32>
    %21 = vector.broadcast %20 : vector<1x64xf32> to vector<32x64xf32>
    %22 = arith.addf %18, %21 : vector<32x64xf32>
    %cst_27 = arith.constant 0.000000e+00 : f32
    %23 = vector.broadcast %cst_27 : f32 to vector<32x64xf32>
    %24 = arith.maximumf %22, %23 : vector<32x64xf32>
    %cst_28 = arith.constant dense<0.000000e+00> : vector<16x64xf32>
    %25 = tpu.matmul %4, %24, %cst_28 {dimension_numbers = #tpu.dot_dimension_numbers<[1], [0], [0], [1], [0, 0, 1, 1], [], []>} : vector<16x32xf32>, vector<32x64xf32>, vector<16x64xf32> -> vector<16x64xf32>
    %cst_29 = arith.constant dense<0.000000e+00> : vector<16x64xf32>
    %26 = tpu.matmul %5, %24, %cst_29 {dimension_numbers = #tpu.dot_dimension_numbers<[1], [0], [0], [1], [0, 0, 1, 1], [], []>} : vector<16x32xf32>, vector<32x64xf32>, vector<16x64xf32> -> vector<16x64xf32>
    %27 = arith.maximumf %25, %26 : vector<16x64xf32>
    %c0_30 = arith.constant 0 : index
    %c0_31 = arith.constant 0 : index
    %28 = vector.load %arg7[%c0_30, %c0_31] : memref<16x16xf32, #tpu.memory_space<vmem>>, vector<16x16xf32>
    %c0_32 = arith.constant 0 : index
    %c0_33 = arith.constant 0 : index
    %29 = vector.load %arg8[%c0_32, %c0_33] : memref<16x16xf32, #tpu.memory_space<vmem>>, vector<16x16xf32>
    %c0_34 = arith.constant 0 : index
    %c0_35 = arith.constant 0 : index
    %30 = vector.load %arg9[%c0_34, %c0_35] : memref<8x16xf32, #tpu.memory_space<vmem>>, vector<8x16xf32>
    %c0_36 = arith.constant 0 : index
    %c0_37 = arith.constant 0 : index
    %31 = vector.load %arg10[%c0_36, %c0_37] : memref<8x16xf32, #tpu.memory_space<vmem>>, vector<8x16xf32>
    %cst_38 = arith.constant dense<0.000000e+00> : vector<16x64xf32>
    %32 = tpu.matmul %28, %27, %cst_38 {dimension_numbers = #tpu.dot_dimension_numbers<[1], [0], [0], [1], [0, 0, 1, 1], [], []>} : vector<16x16xf32>, vector<16x64xf32>, vector<16x64xf32> -> vector<16x64xf32>
    %cst_39 = arith.constant dense<0.000000e+00> : vector<16x64xf32>
    %33 = tpu.matmul %29, %27, %cst_39 {dimension_numbers = #tpu.dot_dimension_numbers<[1], [0], [0], [1], [0, 0, 1, 1], [], []>} : vector<16x16xf32>, vector<16x64xf32>, vector<16x64xf32> -> vector<16x64xf32>
    %c0_40 = arith.constant 0 : index
    %c0_41 = arith.constant 0 : index
    %c0_42 = arith.constant 0 : index
    %c0_43 = arith.constant 0 : index
    %34 = vector.load %arg14[%c0_40, %c0_41, %c0_42, %c0_43] : memref<1x3x64x64xf32, #tpu.memory_space<vmem>>, vector<1x1x64x64xf32>
    %35 = vector.shape_cast %34 : vector<1x1x64x64xf32> to vector<64x64xf32>
    %cst_44 = arith.constant dense<0.000000e+00> : vector<16x64xf32>
    %36 = tpu.matmul %32, %35, %cst_44 {dimension_numbers = #tpu.dot_dimension_numbers<[1], [0], [0], [1], [0, 0, 1, 1], [], []>} : vector<16x64xf32>, vector<64x64xf32>, vector<16x64xf32> -> vector<16x64xf32>
    %c0_45 = arith.constant 0 : index
    %c1_46 = arith.constant 1 : index
    %c0_47 = arith.constant 0 : index
    %c0_48 = arith.constant 0 : index
    %37 = vector.load %arg14[%c0_45, %c1_46, %c0_47, %c0_48] : memref<1x3x64x64xf32, #tpu.memory_space<vmem>>, vector<1x1x64x64xf32>
    %38 = vector.shape_cast %37 : vector<1x1x64x64xf32> to vector<64x64xf32>
    %cst_49 = arith.constant dense<0.000000e+00> : vector<16x64xf32>
    %39 = tpu.matmul %27, %38, %cst_49 {dimension_numbers = #tpu.dot_dimension_numbers<[1], [0], [0], [1], [0, 0, 1, 1], [], []>} : vector<16x64xf32>, vector<64x64xf32>, vector<16x64xf32> -> vector<16x64xf32>
    %40 = arith.addf %36, %39 : vector<16x64xf32>
    %c0_50 = arith.constant 0 : index
    %c2_51 = arith.constant 2 : index
    %c0_52 = arith.constant 0 : index
    %c0_53 = arith.constant 0 : index
    %41 = vector.load %arg14[%c0_50, %c2_51, %c0_52, %c0_53] : memref<1x3x64x64xf32, #tpu.memory_space<vmem>>, vector<1x1x64x64xf32>
    %42 = vector.shape_cast %41 : vector<1x1x64x64xf32> to vector<64x64xf32>
    %cst_54 = arith.constant dense<0.000000e+00> : vector<16x64xf32>
    %43 = tpu.matmul %33, %42, %cst_54 {dimension_numbers = #tpu.dot_dimension_numbers<[1], [0], [0], [1], [0, 0, 1, 1], [], []>} : vector<16x64xf32>, vector<64x64xf32>, vector<16x64xf32> -> vector<16x64xf32>
    %44 = arith.addf %40, %43 : vector<16x64xf32>
    %c0_55 = arith.constant 0 : index
    %c0_56 = arith.constant 0 : index
    %c0_57 = arith.constant 0 : index
    %45 = vector.load %arg15[%c0_55, %c0_56, %c0_57] : memref<1x1x64xf32, #tpu.memory_space<vmem>>, vector<1x1x64xf32>
    %46 = vector.shape_cast %45 : vector<1x1x64xf32> to vector<1x64xf32>
    %47 = vector.broadcast %46 : vector<1x64xf32> to vector<16x64xf32>
    %48 = arith.addf %44, %47 : vector<16x64xf32>
    %cst_58 = arith.constant 0.000000e+00 : f32
    %49 = vector.broadcast %cst_58 : f32 to vector<16x64xf32>
    %50 = arith.maximumf %48, %49 : vector<16x64xf32>
    %cst_59 = arith.constant dense<0.000000e+00> : vector<8x64xf32>
    %51 = tpu.matmul %30, %50, %cst_59 {dimension_numbers = #tpu.dot_dimension_numbers<[1], [0], [0], [1], [0, 0, 1, 1], [], []>} : vector<8x16xf32>, vector<16x64xf32>, vector<8x64xf32> -> vector<8x64xf32>
    %cst_60 = arith.constant dense<0.000000e+00> : vector<8x64xf32>
    %52 = tpu.matmul %31, %50, %cst_60 {dimension_numbers = #tpu.dot_dimension_numbers<[1], [0], [0], [1], [0, 0, 1, 1], [], []>} : vector<8x16xf32>, vector<16x64xf32>, vector<8x64xf32> -> vector<8x64xf32>
    %53 = arith.maximumf %51, %52 : vector<8x64xf32>
    %c0_61 = arith.constant 0 : index
    %c0_62 = arith.constant 0 : index
    %54 = vector.load %arg11[%c0_61, %c0_62] : memref<2x8xf32, #tpu.memory_space<vmem>>, vector<2x8xf32>
    %c0_63 = arith.constant 0 : index
    %c0_64 = arith.constant 0 : index
    %c0_65 = arith.constant 0 : index
    %55 = vector.load %arg16[%c0_63, %c0_64, %c0_65] : memref<1x64x128xf32, #tpu.memory_space<vmem>>, vector<1x64x128xf32>
    %56 = vector.shape_cast %55 : vector<1x64x128xf32> to vector<64x128xf32>
    %cst_66 = arith.constant dense<0.000000e+00> : vector<8x128xf32>
    %57 = tpu.matmul %53, %56, %cst_66 {dimension_numbers = #tpu.dot_dimension_numbers<[1], [0], [0], [1], [0, 0, 1, 1], [], []>} : vector<8x64xf32>, vector<64x128xf32>, vector<8x128xf32> -> vector<8x128xf32>
    %c0_67 = arith.constant 0 : index
    %c0_68 = arith.constant 0 : index
    %c0_69 = arith.constant 0 : index
    %58 = vector.load %arg17[%c0_67, %c0_68, %c0_69] : memref<1x1x128xf32, #tpu.memory_space<vmem>>, vector<1x1x128xf32>
    %59 = vector.shape_cast %58 : vector<1x1x128xf32> to vector<1x128xf32>
    %60 = vector.broadcast %59 : vector<1x128xf32> to vector<8x128xf32>
    %61 = arith.addf %57, %60 : vector<8x128xf32>
    %62 = math.tanh %61 : vector<8x128xf32>
    %c0_70 = arith.constant 0 : index
    %c0_71 = arith.constant 0 : index
    %c0_72 = arith.constant 0 : index
    %63 = vector.load %arg18[%c0_70, %c0_71, %c0_72] : memref<1x1x128xf32, #tpu.memory_space<vmem>>, vector<1x1x128xf32>
    %64 = vector.shape_cast %63 : vector<1x1x128xf32> to vector<1x128xf32>
    %65 = vector.broadcast %64 : vector<1x128xf32> to vector<8x128xf32>
    %66 = arith.mulf %62, %65 : vector<8x128xf32>
    %cst_73 = arith.constant dense<0.000000e+00> : vector<8xf32>
    %67 = vector.multi_reduction <add>, %66, %cst_73 [1] : vector<8x128xf32> to vector<8xf32>
    %68 = vector.shape_cast %67 : vector<8xf32> to vector<8x1xf32>
    %c0_74 = arith.constant 0 : index
    %c0_75 = arith.constant 0 : index
    %c0_76 = arith.constant 0 : index
    %69 = vector.load %arg19[%c0_74, %c0_75, %c0_76] : memref<1x1x1xf32, #tpu.memory_space<vmem>>, vector<1x1x1xf32>
    %70 = vector.shape_cast %69 : vector<1x1x1xf32> to vector<1x1xf32>
    %71 = vector.broadcast %70 : vector<1x1xf32> to vector<8x1xf32>
    %72 = arith.addf %68, %71 : vector<8x1xf32>
    %cst_77 = arith.constant dense<0xFF800000> : vector<1xf32>
    %73 = vector.multi_reduction <maximumf>, %72, %cst_77 [0] : vector<8x1xf32> to vector<1xf32>
    %74 = vector.shape_cast %73 : vector<1xf32> to vector<1x1xf32>
    %75 = vector.broadcast %74 : vector<1x1xf32> to vector<8x1xf32>
    %76 = arith.subf %72, %75 : vector<8x1xf32>
    %77 = math.exp %76 : vector<8x1xf32>
    %78 = vector.broadcast %77 : vector<8x1xf32> to vector<8x64xf32>
    %79 = arith.mulf %78, %53 : vector<8x64xf32>
    %cst_78 = arith.constant dense<0.000000e+00> : vector<2x64xf32>
    %80 = tpu.matmul %54, %79, %cst_78 {dimension_numbers = #tpu.dot_dimension_numbers<[1], [0], [0], [1], [0, 0, 1, 1], [], []>} : vector<2x8xf32>, vector<8x64xf32>, vector<2x64xf32> -> vector<2x64xf32>
    %cst_79 = arith.constant dense<0.000000e+00> : vector<2x1xf32>
    %81 = tpu.matmul %54, %77, %cst_79 {dimension_numbers = #tpu.dot_dimension_numbers<[1], [0], [0], [1], [0, 0, 1, 1], [], []>} : vector<2x8xf32>, vector<8x1xf32>, vector<2x1xf32> -> vector<2x1xf32>
    %cst_80 = arith.constant 1.000000e+00 : f32
    %82 = vector.broadcast %cst_80 : f32 to vector<2x1xf32>
    %83 = arith.divf %82, %81 : vector<2x1xf32>
    %84 = vector.broadcast %83 : vector<2x1xf32> to vector<2x64xf32>
    %85 = arith.mulf %80, %84 : vector<2x64xf32>
    %c0_81 = arith.constant 0 : index
    %c0_82 = arith.constant 0 : index
    %c0_83 = arith.constant 0 : index
    %86 = vector.load %arg20[%c0_81, %c0_82, %c0_83] : memref<1x64x128xf32, #tpu.memory_space<vmem>>, vector<1x64x128xf32>
    %87 = vector.shape_cast %86 : vector<1x64x128xf32> to vector<64x128xf32>
    %cst_84 = arith.constant dense<0.000000e+00> : vector<2x128xf32>
    %88 = tpu.matmul %85, %87, %cst_84 {dimension_numbers = #tpu.dot_dimension_numbers<[1], [0], [0], [1], [0, 0, 1, 1], [], []>} : vector<2x64xf32>, vector<64x128xf32>, vector<2x128xf32> -> vector<2x128xf32>
    %c0_85 = arith.constant 0 : index
    %c0_86 = arith.constant 0 : index
    %c0_87 = arith.constant 0 : index
    %89 = vector.load %arg21[%c0_85, %c0_86, %c0_87] : memref<1x1x128xf32, #tpu.memory_space<vmem>>, vector<1x1x128xf32>
    %90 = vector.shape_cast %89 : vector<1x1x128xf32> to vector<1x128xf32>
    %91 = vector.broadcast %90 : vector<1x128xf32> to vector<2x128xf32>
    %92 = arith.addf %88, %91 : vector<2x128xf32>
    %c0_88 = arith.constant 0 : index
    %c0_89 = arith.constant 0 : index
    %c0_90 = arith.constant 0 : index
    %c0_91 = arith.constant 0 : index
    %93 = vector.load %arg22[%c0_88, %c0_89, %c0_90, %c0_91] : memref<1x1x2x128xf32, #tpu.memory_space<vmem>>, vector<1x1x2x128xf32>
    %94 = vector.shape_cast %93 : vector<1x1x2x128xf32> to vector<2x128xf32>
    %95 = vector.shape_cast %92 : vector<2x128xf32> to vector<1x1x2x128xf32>
    tpu.vector_store %arg22[%c0_88, %c0_89, %c0_90, %c0_91], %95 {strides = array<i32>} : memref<1x1x2x128xf32, #tpu.memory_space<vmem>>, vector<1x1x2x128xf32>,
    return
  }
  func.func @transform_0(%arg0: i32, %arg1: i32) -> (i32, i32, i32) {
    %c0_i32 = arith.constant 0 : i32
    %c0_i32_0 = arith.constant 0 : i32
    %c0_i32_1 = arith.constant 0 : i32
    return %arg1, %c0_i32, %c0_i32_0 : i32, i32, i32
  }
  func.func @transform_1(%arg0: i32, %arg1: i32) -> (i32, i32) {
    %c0_i32 = arith.constant 0 : i32
    %c0_i32_0 = arith.constant 0 : i32
    %c0_i32_1 = arith.constant 0 : i32
    return %c0_i32, %c0_i32_0 : i32, i32
  }
  func.func @transform_2(%arg0: i32, %arg1: i32) -> (i32, i32) {
    %c0_i32 = arith.constant 0 : i32
    %c0_i32_0 = arith.constant 0 : i32
    %c0_i32_1 = arith.constant 0 : i32
    return %c0_i32, %c0_i32_0 : i32, i32
  }
  func.func @transform_3(%arg0: i32, %arg1: i32) -> (i32, i32) {
    %c0_i32 = arith.constant 0 : i32
    %c0_i32_0 = arith.constant 0 : i32
    %c0_i32_1 = arith.constant 0 : i32
    return %c0_i32, %c0_i32_0 : i32, i32
  }
  func.func @transform_4(%arg0: i32, %arg1: i32) -> (i32, i32) {
    %c0_i32 = arith.constant 0 : i32
    %c0_i32_0 = arith.constant 0 : i32
    %c0_i32_1 = arith.constant 0 : i32
    return %c0_i32, %c0_i32_0 : i32, i32
  }
  func.func @transform_5(%arg0: i32, %arg1: i32) -> (i32, i32) {
    %c0_i32 = arith.constant 0 : i32
    %c0_i32_0 = arith.constant 0 : i32
    %c0_i32_1 = arith.constant 0 : i32
    return %c0_i32, %c0_i32_0 : i32, i32
  }
  func.func @transform_6(%arg0: i32, %arg1: i32) -> (i32, i32) {
    %c0_i32 = arith.constant 0 : i32
    %c0_i32_0 = arith.constant 0 : i32
    %c0_i32_1 = arith.constant 0 : i32
    return %c0_i32, %c0_i32_0 : i32, i32
  }
  func.func @transform_7(%arg0: i32, %arg1: i32) -> (i32, i32) {
    %c0_i32 = arith.constant 0 : i32
    %c0_i32_0 = arith.constant 0 : i32
    %c0_i32_1 = arith.constant 0 : i32
    return %c0_i32, %c0_i32_0 : i32, i32
  }
  func.func @transform_8(%arg0: i32, %arg1: i32) -> (i32, i32) {
    %c0_i32 = arith.constant 0 : i32
    %c0_i32_0 = arith.constant 0 : i32
    %c0_i32_1 = arith.constant 0 : i32
    return %c0_i32, %c0_i32_0 : i32, i32
  }
  func.func @transform_9(%arg0: i32, %arg1: i32) -> (i32, i32) {
    %c0_i32 = arith.constant 0 : i32
    %c0_i32_0 = arith.constant 0 : i32
    %c0_i32_1 = arith.constant 0 : i32
    return %c0_i32, %c0_i32_0 : i32, i32
  }
  func.func @transform_10(%arg0: i32, %arg1: i32) -> (i32, i32, i32, i32) {
    %c0_i32 = arith.constant 0 : i32
    %c0_i32_0 = arith.constant 0 : i32
    %c0_i32_1 = arith.constant 0 : i32
    %c0_i32_2 = arith.constant 0 : i32
    return %arg0, %c0_i32, %c0_i32_0, %c0_i32_1 : i32, i32, i32, i32
  }
  func.func @transform_11(%arg0: i32, %arg1: i32) -> (i32, i32, i32) {
    %c0_i32 = arith.constant 0 : i32
    %c0_i32_0 = arith.constant 0 : i32
    %c0_i32_1 = arith.constant 0 : i32
    return %arg0, %c0_i32, %c0_i32_0 : i32, i32, i32
  }
  func.func @transform_12(%arg0: i32, %arg1: i32) -> (i32, i32, i32, i32) {
    %c0_i32 = arith.constant 0 : i32
    %c0_i32_0 = arith.constant 0 : i32
    %c0_i32_1 = arith.constant 0 : i32
    %c0_i32_2 = arith.constant 0 : i32
    return %arg0, %c0_i32, %c0_i32_0, %c0_i32_1 : i32, i32, i32, i32
  }
  func.func @transform_13(%arg0: i32, %arg1: i32) -> (i32, i32, i32) {
    %c0_i32 = arith.constant 0 : i32
    %c0_i32_0 = arith.constant 0 : i32
    %c0_i32_1 = arith.constant 0 : i32
    return %arg0, %c0_i32, %c0_i32_0 : i32, i32, i32
  }
  func.func @transform_14(%arg0: i32, %arg1: i32) -> (i32, i32, i32) {
    %c0_i32 = arith.constant 0 : i32
    %c0_i32_0 = arith.constant 0 : i32
    %c0_i32_1 = arith.constant 0 : i32
    return %arg0, %c0_i32, %c0_i32_0 : i32, i32, i32
  }
  func.func @transform_15(%arg0: i32, %arg1: i32) -> (i32, i32, i32) {
    %c0_i32 = arith.constant 0 : i32
    %c0_i32_0 = arith.constant 0 : i32
    %c0_i32_1 = arith.constant 0 : i32
    return %arg0, %c0_i32, %c0_i32_0 : i32, i32, i32
  }
  func.func @transform_16(%arg0: i32, %arg1: i32) -> (i32, i32, i32) {
    %c0_i32 = arith.constant 0 : i32
    %c0_i32_0 = arith.constant 0 : i32
    %c0_i32_1 = arith.constant 0 : i32
    return %arg0, %c0_i32, %c0_i32_0 : i32, i32, i32
  }
  func.func @transform_17(%arg0: i32, %arg1: i32) -> (i32, i32, i32) {
    %c0_i32 = arith.constant 0 : i32
    %c0_i32_0 = arith.constant 0 : i32
    %c0_i32_1 = arith.constant 0 : i32
    return %arg0, %c0_i32, %c0_i32_0 : i32, i32, i32
  }
  func.func @transform_18(%arg0: i32, %arg1: i32) -> (i32, i32, i32) {
    %c0_i32 = arith.constant 0 : i32
    %c0_i32_0 = arith.constant 0 : i32
    %c0_i32_1 = arith.constant 0 : i32
    return %arg0, %c0_i32, %c0_i32_0 : i32, i32, i32
  }
  func.func @transform_19(%arg0: i32, %arg1: i32) -> (i32, i32, i32) {
    %c0_i32 = arith.constant 0 : i32
    %c0_i32_0 = arith.constant 0 : i32
    %c0_i32_1 = arith.constant 0 : i32
    return %arg0, %c0_i32, %c0_i32_0 : i32, i32, i32
  }
  func.func @transform_20(%arg0: i32, %arg1: i32) -> (i32, i32, i32, i32) {
    %c0_i32 = arith.constant 0 : i32
    %c0_i32_0 = arith.constant 0 : i32
    %c0_i32_1 = arith.constant 0 : i32
    return %arg0, %arg1, %c0_i32, %c0_i32_0 : i32, i32, i32, i32
  }
}

</mosaic_0001>

<bundles_post_ra>
// kernel: tpu_custom_call.1
= control target key start
LH: loop header
LB: loop body
LE: loop exit
PB: predicated region body
PF: predicated region fallthrough
CT: control target
= control target key end

     0   :  { %s4655_s0 = inlined_call_operand.vmem [shape: f32[1,32,4], index: 0, kind: input, shape index: {}]   ;;  %s4656_s1 = inlined_call_operand.vmem [shape: f32[32,32], index: 1, kind: input, shape index: {}]   ;;  %s4657_s2 = inlined_call_operand.hbm [shape: f32[32,32], index: 2, kind: input, shape index: {}]   ;;  %s4658_s3 = inlined_call_operand.hbm [shape: f32[16,32], index: 3, kind: input, shape index: {}]   ;;  %s4659_s4 = inlined_call_operand.hbm [shape: f32[16,32], index: 4, kind: input, shape index: {}]   ;;  %s4660_s5 = inlined_call_operand.hbm [shape: f32[16,16], index: 5, kind: input, shape index: {}]   ;;  %s4661_s6 = inlined_call_operand.hbm [shape: f32[16,16], index: 6, kind: input, shape index: {}]   ;;  %s4662_s7 = inlined_call_operand.vmem [shape: f32[8,16], index: 7, kind: input, shape index: {}]   ;;  %s4663_s8 = inlined_call_operand.hbm [shape: f32[8,16], index: 8, kind: input, shape index: {}]   ;;  %s4664_s9 = inlined_call_operand.vmem [shape: f32[2,8], index: 9, kind: input, shape index: {}]   ;;  %s4665_s10 = inlined_call_operand.vmem [shape: f32[2,3,4,64], index: 10, kind: input, shape index: {}]   ;;  %s4666_s11 = inlined_call_operand.vmem [shape: f32[2,1,64], index: 11, kind: input, shape index: {}]   ;;  %s4667_s12 = inlined_call_operand.hbm [shape: f32[2,3,64,64], index: 12, kind: input, shape index: {}]   ;;  %s4668_s13 = inlined_call_operand.vmem [shape: f32[2,1,64], index: 13, kind: input, shape index: {}]   ;;  %s4669_s14 = inlined_call_operand.hbm [shape: f32[2,64,128], index: 14, kind: input, shape index: {}]   ;;  %s4670_s15 = inlined_call_operand.vmem [shape: f32[2,1,128], index: 15, kind: input, shape index: {}]   ;;  %s4671_s16 = inlined_call_operand.vmem [shape: f32[2,1,128], index: 16, kind: input, shape index: {}]   ;;  %s4672_s17 = inlined_call_operand.vmem [shape: f32[2,1,1], index: 17, kind: input, shape index: {}]   ;;  %s4673_s18 = inlined_call_operand.hbm [shape: f32[2,64,128], index: 18, kind: input, shape index: {}]   ;;  %s4674_s19 = inlined_call_operand.vmem [shape: f32[2,1,128], index: 19, kind: input, shape index: {}]   ;;  %s4675_s20 = inlined_call_operand.hbm [shape: f32[2,1,2,128], index: 20, kind: output, shape index: {}]  }
   0x1   :  { %4713 = sst [smem:[#allocation30_spill]] %s4655_s0 }
   0x2   :  { %4714 = sst [smem:[#allocation31_spill]] %s4656_s1 }
   0x3   :  { %4715 = sst [smem:[#allocation32_spill]] %s4657_s2 }
   0x4   :  { %4716 = sst [smem:[#allocation33_spill]] %s4658_s3 }
   0x5   :  { %4717 = sst [smem:[#allocation34_spill]] %s4659_s4 }
   0x6   :  { %4718 = sst [smem:[#allocation35_spill]] %s4660_s5 }
   0x7   :  { %4719 = sst [smem:[#allocation36_spill]] %s4662_s7 }
   0x8   :  { %4720 = sst [smem:[#allocation37_spill]] %s4664_s9 }
   0x9   :  { %4721 = sst [smem:[#allocation38_spill]] %s4665_s10 }
   0xa   :  { %4722 = sst [smem:[#allocation39_spill]] %s4666_s11 }
   0xb   :  { %4723 = sst [smem:[#allocation40_spill]] %s4667_s12 }
   0xc   :  { %4724 = sst [smem:[#allocation41_spill]] %s4668_s13 }
   0xd   :  { %4725 = sst [smem:[#allocation42_spill]] %s4669_s14 }
   0xe   :  { %4726 = sst [smem:[#allocation43_spill]] %s4670_s15 }
   0xf   :  { %4727 = sst [smem:[#allocation44_spill]] %s4671_s16 }
  0x10   :  { %4728 = sst [smem:[#allocation45_spill]] %s4672_s17 }
  0x11   :  { %4729 = sst [smem:[#allocation46_spill]] %s4674_s19 }
  0x12   :  { %4730 = sst [smem:[#allocation47_spill]] %s4675_s20 }
  0x13   :  { %25 = vsyncpa [#allocation3], 0 }
  0x14   :  { %26 = vsyncpa [#allocation6], 0 }
  0x15   :  { %27 = vsyncpa [#allocation9], 0 }
  0x16   :  { %28 = vsyncpa [#allocation12], 0 }
  0x17   :  { %29 = vsyncpa [#allocation4], 0 }
  0x18   :  { %31 = vsyncpa [#allocation4 + $0x1], 0  ;;  %s4059_s1 = smov 0   ;;  %s4061_s22 = smov 0  }
  0x19   :  { %s4063_s23 = smov 0   ;;  %s4065_s24 = smov 0  }
  0x1a   :  { %s4067_s2 = smov 0   ;;  %s4069_s25 = smov 0  }
  0x1b LB: > { %4731 = sst [smem:[#allocation23_spill]] %s3916_s1  ;;  %s4090_s3 = sadd.s32 4294967295, %s3936_s25   ;;  %s3936_s25 = sphi %s4069_s25, %s37_s25   ;;  %s3932_s2 = sphi %s4067_s2, %s4801_s2   ;;  %s3928_s24 = sphi %s4065_s24, %s4800_s24   ;;  %s3924_s23 = sphi %s4063_s23, %s4799_s23   ;;  %s3920_s22 = sphi %s4061_s22, %s4798_s22   ;;  %s3916_s1 = sphi %s4059_s1, %s4797_s1  }
  0x1c   : > { %4732 = sst [smem:[#allocation24_spill]] %s3928_s24  ;;  %p2883_p0 = scmp.ge.s32.totalorder %s3936_s25, 1 }
  0x1d   : > { %4733 = sst [smem:[#allocation25_spill]] %s3936_s25  ;;  %p4682_p1 = scmp.eq.s32.totalorder %s4090_s3, 0 }
  0x1e   : > { %p557_p2 = scmp.lt.s32.totalorder %s3936_s25, 3  ;;  %s3938_s27 = smov [#allocation2]  }
  0x1f   : > { %s580_s28 = sshll.u32 %s3938_s27, 4  ;;  %s4736_s0 = sld [smem:[#allocation32_spill]]  ;;  %s581_s28 = int_to_ptr.vmem [resolvable:$true] %s580_s28 }
  0x20   : > { %p4095_p3 = pnand %p2883_p0, %p557_p2 }
  0x22   : > { %s4734_s26 = scalar_select %p4095_p3, 1, 0 }
  0x23   : > { %p3465_p4 = pneg %p4095_p3 }
  0x25   : > { %p4104_p6 = pnand %p3465_p4, %p4682_p1  ;;  %s3580_s21 = scalar_lea.hbm %s4736_s0, 512 }
  0x26   : > { %p3581_p7 = scmp.ne.s32.totalorder %s4736_s0, %s3580_s21  ;;  %p3587_p11 = scmp.lt.u32.totalorder %s3580_s21, %s4736_s0 }
  0x27   : > { %s4735_s4 = scalar_select %p4104_p6, 1, 0 }
  0x28   : > { %p4116_p8 = pneg %p4104_p6 }
  0x2a   : > { %s4737_s27 = scalar_select %p4116_p8, 1, 0 }
  0x2b   : > { %p3583_p9 = pnand %p4116_p8, %p3581_p7 }
  0x2d   : > { %p3584_p10 = pneg %p3583_p9 }
  0x2f   : > { %p3589_p12 = pnand %p3587_p11, %p3584_p10 }
  0x31   : > { %3592 = shalt.err (!%p3589_p12)
}
  0x32   : > { %s3593_s29 = scalar_lea.vmem %s581_s28, 512  ;;  %p3601_p4 = scmp.lt.s32.totalorder %s581_s28, %s581_s28 }
  0x33   : > { %p3594_p13 = scmp.ne.s32.totalorder %s581_s28, %s3593_s29  ;;  %p3602_p5 = scmp.lt.s32.totalorder %s3593_s29, %s3593_s29 }
  0x35   : > { %p3596_p0 = pnand %p3594_p13, %p4116_p8  ;;  %p3603_p1 = por %p3602_p5, %p3601_p4 }
  0x37   : > { %p3597_p2 = pneg %p3596_p0 }
  0x39   : > { %p3604_p3 = pnand %p3603_p1, %p3597_p2 }
  0x3b   : > { %3607 = shalt.err (!%p3604_p3)
}
  0x3c   : > { %s4684_s19 = smov 128   ;;  %s4686_s9 = smov 8  }
  0x3d   : > { %3468 = dma.hbm_to_vmem [thread:$0]  (!%p4104_p6), %s4736_s0, 512, %s581_s28, [#allocation3], %s4684_s19, %s4684_s19, %s4686_s9  }
  0x3e   : > { %s2882_s30 = sadd.s32 4294967294, %s3936_s25   ;;  %s49_s21 = sadd.s32 1, %s3932_s2 }
  0x3f   : > { %s323_s29 = sadd.s32 1, %s3924_s23  ;;  %p51_p1 = scmp.ge.s32.totalorder %s49_s21, 2 }
  0x40   : > { %p330_p3 = scmp.ne.s32.totalorder %s3924_s23, %s3920_s22  ;;  %p331_p5 = scmp.eq.s32.totalorder %s3936_s25, 0 }
  0x41   : > { %p336_p7 = scmp.ne.s32.totalorder %s3920_s22, %s3916_s1  ;;  %s4803_s21 = smov (%p51_p1, %s49_s21), 0 }
  0x42   : > { %4738 = sst [smem:[#allocation26_spill]] %s4803_s21  ;;  %p4145_p9 = por %p331_p5, %p330_p3 }
  0x43   : > { %p4740_p10 = scmp.eq.s32.totalorder %s4090_s3, 0  ;;  %s320_s17 = ssub.s32 %s3932_s2, %s4803_s21 }
  0x44   : > { %p544_p12 = scmp.eq.s32.totalorder %s4090_s3, 1  ;;  %p321_p13 = scmp.eq.s32.totalorder %s320_s17, 0 }
  0x45   : > { %p4151_p11 = por %p4740_p10, %p336_p7  ;;  %p550_p0 = scmp.eq.s32.totalorder %s2882_s30, 1 }
  0x46   : > { %p4158_p2 = por %p544_p12, %p330_p3  ;;  %p3504_p4 = scmp.lt.s32.totalorder %s3936_s25, 2 }
  0x47   : > { %s4741_s28 = scalar_select %p4151_p11, 1, 0 }
  0x48   : > { %s4742_s20 = scalar_select %p4158_p2, 1, 0 }
  0x49   : > { %s4164_s19 = scalar_select %p321_p13, %s3924_s23, %s323_s29  }
  0x4a   : > { %4743 = sst [smem:[#allocation27_spill]] %s4742_s20  ;;  %p4166_p1 = por %p550_p0, %p336_p7 }
  0x4b   : > { %4744 = sst [smem:[#allocation28_spill]] %s4164_s19  ;;  %s677_s0 = sand.u32 1, %s3936_s25  }
  0x4c   : > { %s4745_s9 = scalar_select %p4166_p1, 1, 0 }
  0x4d   : > { %s4695_s1 = sand.u32 1, %s3924_s23   ;;  %p4176_p5 = pnand %p3504_p4, %p4145_p9 }
  0x4e   : > { %4746 = sst [smem:[#allocation29_spill]] %s4745_s9  ;;  %s3429_s15 = smul.u32 192, %s4695_s1 }
  0x4f   : > { %s4747_s21 = scalar_select %p4176_p5, 1, 0 }
  0x50   : > { %s3430_s30 = smul.u32 3072, %s3932_s2  ;;  %s4748_s12 = sld [smem:[#allocation40_spill]] }
  0x51   : > { %s681_s19 = scalar_lea.vmem [#allocation13], %s3429_s15  ;;  %s3941_s16 = smov [#allocation5]  }
  0x52   : > { %s688_s25 = sshll.u32 %s681_s19, 4  ;;  %s4188_s1 = sshll.u32 %s3941_s16, 4  ;;  %s4186_s25 = int_to_ptr.vmem [resolvable:$true] %s688_s25  ;;  %s594_s1 = int_to_ptr.vmem [resolvable:$true] %s4188_s1 }
  0x53   : > { %s4190_s9 = scalar_lea.sflag [#allocation3], %s677_s0  ;;  %p4196_p7 = pneg %p4176_p5 }
  0x55   : > { %s4749_s20 = scalar_select %p4196_p7, 1, 0 }
  0x56   : > { %s4184_s29 = scalar_lea.hbm %s4748_s12, %s3430_s30  ;;  %s3613_s30 = scalar_lea.hbm %s4748_s12, 6144 }
  0x57   : > { %s3608_s7 = scalar_lea.hbm %s4184_s29, 3072  ;;  %p3614_p12 = scmp.lt.u32.totalorder %s4184_s29, %s4748_s12 }
  0x58   : > { %p3609_p3 = scmp.ne.s32.totalorder %s4184_s29, %s3608_s7  ;;  %p3615_p13 = scmp.lt.u32.totalorder %s3613_s30, %s3608_s7 }
  0x59   : > { %p3617_p4 = scmp.lt.u32.totalorder %s3608_s7, %s4184_s29 }
  0x5a   : > { %p3611_p9 = pnand %p4196_p7, %p3609_p3  ;;  %p3616_p0 = por %p3615_p13, %p3614_p12 }
  0x5c   : > { %p3612_p10 = pneg %p3611_p9  ;;  %p3618_p1 = por %p3617_p4, %p3616_p0 }
  0x5e   : > { %p3619_p2 = pnand %p3618_p1, %p3612_p10 }
  0x60   : > { %3622 = shalt.err (!%p3619_p2)
}
  0x61   : > { %s3623_s0 = scalar_lea.vmem %s4186_s25, 3072  ;;  %s3942_s15 = smov [#allocation13]  }
  0x62   : > { %p3624_p3 = scmp.ne.s32.totalorder %s4186_s25, %s3623_s0  ;;  %s3628_s19 = sshll.u32 %s3942_s15, 4  ;;  %s3629_s19 = int_to_ptr.vmem [resolvable:$false] %s3628_s19 }
  0x63   : > { %s3630_s17 = scalar_lea.vmem %s3629_s19, 6144  ;;  %p3631_p6 = scmp.lt.s32.totalorder %s4186_s25, %s3629_s19 }
  0x64   : > { %p3626_p9 = pnand %p3624_p3, %p4196_p7  ;;  %p3632_p8 = scmp.lt.s32.totalorder %s3630_s17, %s3623_s0 }
  0x66   : > { %p3627_p11 = pneg %p3626_p9  ;;  %p3633_p12 = por %p3632_p8, %p3631_p6 }
  0x68   : > { %p3634_p13 = pnand %p3633_p12, %p3627_p11 }
  0x6a   : > { %3637 = shalt.err (!%p3634_p13)
}
  0x6b   : > { %s4750_s7 = smov 8   ;;  %s4751_s30 = smov 128  }
  0x6c   : > { %3487 = dma.hbm_to_vmem [thread:$0]  (!%p4176_p5), %s4184_s29, 3072, %s4186_s25, %s4190_s9, %s4751_s30, %s4751_s30, %s4750_s7  }
  0x6d   : > { %s4752_s12 = sld [smem:[#allocation33_spill]]  ;;  %p4753_p8 = scmp.ne.s32.totalorder %s4737_s27, 0 }
  0x73   : > { %s3638_s19 = scalar_lea.hbm %s4752_s12, 256 }
  0x74   : > { %p3639_p6 = scmp.ne.s32.totalorder %s4752_s12, %s3638_s19  ;;  %p3645_p1 = scmp.lt.u32.totalorder %s3638_s19, %s4752_s12 }
  0x76   : > { %p3641_p11 = pnand %p3639_p6, %p4753_p8 }
  0x78   : > { %p3642_p2 = pneg %p3641_p11 }
  0x7a   : > { %p3647_p10 = pnand %p3645_p1, %p3642_p2 }
  0x7c   : > { %3650 = shalt.err (!%p3647_p10)
}
  0x7d   : > { %s3651_s10 = scalar_lea.vmem %s594_s1, 256  ;;  %p3659_p9 = scmp.lt.s32.totalorder %s594_s1, %s594_s1 }
  0x7e   : > { %p3652_p0 = scmp.ne.s32.totalorder %s594_s1, %s3651_s10  ;;  %p3660_p12 = scmp.lt.s32.totalorder %s3651_s10, %s3651_s10 }
  0x80   : > { %p3654_p4 = pnand %p3652_p0, %p4753_p8  ;;  %p3661_p13 = por %p3660_p12, %p3659_p9 }
  0x82   : > { %p3655_p3 = pneg %p3654_p4 }
  0x84   : > { %p3662_p5 = pnand %p3661_p13, %p3655_p3 }
  0x86   : > { %3665 = shalt.err (!%p3662_p5)
}
  0x87   : > { %p4754_p6 = scmp.ne.s32.totalorder %s4735_s4, 0  ;;  %s3943_s25 = smov [#allocation8]  }
  0x88   : > { %s619_s29 = sshll.u32 %s3943_s25, 4  ;;  %s4755_s16 = sand.u32 1, %s3924_s23   ;;  %s620_s29 = int_to_ptr.vmem [resolvable:$true] %s619_s29 }
  0x89   : > { %3471 = dma.hbm_to_vmem [thread:$0]  (!%p4754_p6), %s4752_s12, 256, %s594_s1, [#allocation6], %s4751_s30, %s4751_s30, %s4750_s7  }
  0x8a   : > { %s4247_s15 = sshll.u32 %s4755_s16, 6  ;;  %s4756_s5 = sld [smem:[#allocation35_spill]] }
  0x90   : > { %s3666_s0 = scalar_lea.hbm %s4756_s5, 256 }
  0x91   : > { %p3667_p5 = scmp.ne.s32.totalorder %s4756_s5, %s3666_s0  ;;  %p3673_p1 = scmp.lt.u32.totalorder %s3666_s0, %s4756_s5 }
  0x93   : > { %p3669_p11 = pnand %p3667_p5, %p4753_p8 }
  0x95   : > { %p3670_p2 = pneg %p3669_p11 }
  0x97   : > { %p3675_p10 = pnand %p3673_p1, %p3670_p2 }
  0x99   : > { %3678 = shalt.err (!%p3675_p10)
}
  0x9a   : > { %s3679_s1 = scalar_lea.vmem %s620_s29, 256  ;;  %p3687_p9 = scmp.lt.s32.totalorder %s620_s29, %s620_s29 }
  0x9b   : > { %p3680_p0 = scmp.ne.s32.totalorder %s620_s29, %s3679_s1  ;;  %p3688_p12 = scmp.lt.s32.totalorder %s3679_s1, %s3679_s1 }
  0x9d   : > { %p3682_p4 = pnand %p3680_p0, %p4753_p8  ;;  %p3689_p13 = por %p3688_p12, %p3687_p9 }
  0x9f   : > { %p3683_p3 = pneg %p3682_p4 }
  0xa1   : > { %p3690_p7 = pnand %p3689_p13, %p3683_p3 }
  0xa3   : > { %3693 = shalt.err (!%p3690_p7)
}
  0xa4   : > { %3477 = dma.hbm_to_vmem [thread:$0]  (!%p4754_p6), %s4756_s5, 256, %s620_s29, [#allocation9], %s4751_s30, %s4751_s30, %s4750_s7  }
  0xa5   : > { %s4709_s16 = sshll.u32 %s3932_s2, 10  ;;  %s708_s10 = scalar_lea.vmem [#allocation14], %s4247_s15 }
  0xa6   : > { %s715_s19 = sshll.u32 %s708_s10, 4  ;;  %s4757_s14 = sld [smem:[#allocation42_spill]]  ;;  %s4279_s19 = int_to_ptr.vmem [resolvable:$true] %s715_s19 }
  0xa7   : > { %p4758_p5 = scmp.ne.s32.totalorder %s4749_s20, 0 }
  0xac   : > { %s4277_s11 = scalar_lea.hbm %s4757_s14, %s4709_s16  ;;  %s3699_s24 = scalar_lea.hbm %s4757_s14, 2048 }
  0xad   : > { %s3694_s13 = scalar_lea.hbm %s4277_s11, 1024  ;;  %p3700_p1 = scmp.lt.u32.totalorder %s4277_s11, %s4757_s14 }
  0xae   : > { %p3695_p7 = scmp.ne.s32.totalorder %s4277_s11, %s3694_s13  ;;  %p3701_p10 = scmp.lt.u32.totalorder %s3699_s24, %s3694_s13 }
  0xaf   : > { %p3703_p4 = scmp.lt.u32.totalorder %s3694_s13, %s4277_s11 }
  0xb0   : > { %p3697_p11 = pnand %p3695_p7, %p4758_p5  ;;  %p3702_p0 = por %p3701_p10, %p3700_p1 }
  0xb2   : > { %p3698_p2 = pneg %p3697_p11  ;;  %p3704_p3 = por %p3703_p4, %p3702_p0 }
  0xb4   : > { %p3705_p9 = pnand %p3704_p3, %p3698_p2 }
  0xb6   : > { %3708 = shalt.err (!%p3705_p9)
}
  0xb7   : > { %s3709_s0 = scalar_lea.vmem %s4279_s19, 1024  ;;  %s3944_s17 = smov [#allocation14]  }
  0xb8   : > { %p3710_p12 = scmp.ne.s32.totalorder %s4279_s19, %s3709_s0  ;;  %s3714_s29 = sshll.u32 %s3944_s17, 4  ;;  %s3715_s29 = int_to_ptr.vmem [resolvable:$false] %s3714_s29 }
  0xb9   : > { %s3716_s1 = scalar_lea.vmem %s3715_s29, 2048  ;;  %p3717_p11 = scmp.lt.s32.totalorder %s4279_s19, %s3715_s29 }
  0xba   : > { %p3712_p13 = pnand %p3710_p12, %p4758_p5  ;;  %p3718_p6 = scmp.lt.s32.totalorder %s3716_s1, %s3709_s0 }
  0xbc   : > { %p3713_p7 = pneg %p3712_p13  ;;  %p3719_p1 = por %p3718_p6, %p3717_p11 }
  0xbe   : > { %p3720_p10 = pnand %p3719_p1, %p3713_p7 }
  0xc0   : > { %3723 = shalt.err (!%p3720_p10)
}
  0xc1   : > { %p4759_p2 = scmp.ne.s32.totalorder %s4747_s21, 0  ;;  %s3945_s13 = smov [#allocation7]  }
  0xc2   : > { %s606_s24 = sshll.u32 %s3945_s13, 4  ;;  %s3946_s25 = smov [#allocation10]   ;;  %s607_s24 = int_to_ptr.vmem [resolvable:$true] %s606_s24 }
  0xc3   : > { %3490 = dma.hbm_to_vmem [thread:$0]  (!%p4759_p2), %s4277_s11, 1024, %s4279_s19, %s4190_s9, %s4751_s30, %s4751_s30, %s4750_s7  }
  0xc4   : > { %s632_s10 = sshll.u32 %s3946_s25, 4  ;;  %s4760_s29 = sld [smem:[#allocation34_spill]]  ;;  %s4306_s10 = int_to_ptr.vmem [resolvable:$true] %s632_s10 }
  0xca   : > { %s3724_s1 = scalar_lea.hbm %s4760_s29, 256 }
  0xcb   : > { %p3725_p6 = scmp.ne.s32.totalorder %s4760_s29, %s3724_s1  ;;  %p3731_p3 = scmp.lt.u32.totalorder %s3724_s1, %s4760_s29 }
  0xcd   : > { %p3727_p0 = pnand %p3725_p6, %p4753_p8 }
  0xcf   : > { %p3728_p4 = pneg %p3727_p0 }
  0xd1   : > { %p3733_p9 = pnand %p3731_p3, %p3728_p4 }
  0xd3   : > { %3736 = shalt.err (!%p3733_p9)
}
  0xd4   : > { %s3737_s11 = scalar_lea.vmem %s607_s24, 256  ;;  %p3745_p11 = scmp.lt.s32.totalorder %s607_s24, %s607_s24 }
  0xd5   : > { %p3738_p12 = scmp.ne.s32.totalorder %s607_s24, %s3737_s11  ;;  %p3746_p1 = scmp.lt.s32.totalorder %s3737_s11, %s3737_s11 }
  0xd7   : > { %p3740_p13 = pnand %p3738_p12, %p4753_p8  ;;  %p3747_p10 = por %p3746_p1, %p3745_p11 }
  0xd9   : > { %p3741_p7 = pneg %p3740_p13 }
  0xdb   : > { %p3748_p2 = pnand %p3747_p10, %p3741_p7 }
  0xdd   : > { %3751 = shalt.err (!%p3748_p2)
}
  0xde   : > { %p4761_p6 = scmp.ne.s32.totalorder %s4735_s4, 0  ;;  %s3752_s25 = scalar_lea.hbm %s4661_s6, 256 }
  0xdf   : > { %p3753_p0 = scmp.ne.s32.totalorder %s4661_s6, %s3752_s25  ;;  %p3759_p3 = scmp.lt.u32.totalorder %s3752_s25, %s4661_s6 }
  0xe0   : > { %3474 = dma.hbm_to_vmem [thread:$0]  (!%p4761_p6), %s4760_s29, 256, %s607_s24, [#allocation6], %s4751_s30, %s4751_s30, %s4750_s7  }
  0xe1   : > { %p3755_p2 = pnand %p3753_p0, %p4753_p8 }
  0xe3   : > { %p3756_p4 = pneg %p3755_p2 }
  0xe5   : > { %p3761_p9 = pnand %p3759_p3, %p3756_p4 }
  0xe7   : > { %3764 = shalt.err (!%p3761_p9)
}
  0xe8   : > { %s3765_s24 = scalar_lea.vmem %s4306_s10, 256  ;;  %p3773_p11 = scmp.lt.s32.totalorder %s4306_s10, %s4306_s10 }
  0xe9   : > { %p3766_p12 = scmp.ne.s32.totalorder %s4306_s10, %s3765_s24  ;;  %p3774_p1 = scmp.lt.s32.totalorder %s3765_s24, %s3765_s24 }
  0xeb   : > { %p3768_p13 = pnand %p3766_p12, %p4753_p8  ;;  %p3775_p10 = por %p3774_p1, %p3773_p11 }
  0xed   : > { %p3769_p7 = pneg %p3768_p13 }
  0xef   : > { %p3776_p0 = pnand %p3775_p10, %p3769_p7 }
  0xf1   : > { %3779 = shalt.err (!%p3776_p0)
}
  0xf2   : > { %3480 = dma.hbm_to_vmem [thread:$0]  (!%p4761_p6), %s4661_s6, 256, %s4306_s10, [#allocation9], %s4751_s30, %s4751_s30, %s4750_s7  }
  0xf3   : > { %s3947_s12 = smov [#allocation11]   ;;  %s4762_s13 = sshll.u32 %s3932_s2, 10 }
  0xf4   : > { %s649_s16 = sshll.u32 %s3947_s12, 4  ;;  %s4360_s17 = scalar_lea.hbm %s4673_s18, %s4762_s13  ;;  %s650_s16 = int_to_ptr.vmem [resolvable:$true] %s649_s16 }
  0xf5   : > { %s747_s1 = scalar_lea.vmem [#allocation15], %s4247_s15  ;;  %s3780_s29 = scalar_lea.hbm %s4663_s8, 128 }
  0xf6   : > { %s754_s19 = sshll.u32 %s747_s1, 4  ;;  %p3781_p2 = scmp.ne.s32.totalorder %s4663_s8, %s3780_s29  ;;  %s4381_s19 = int_to_ptr.vmem [resolvable:$true] %s754_s19 }
  0xf7   : > { %p3787_p9 = scmp.lt.u32.totalorder %s3780_s29, %s4663_s8 }
  0xf8   : > { %p3783_p4 = pnand %p3781_p2, %p4753_p8 }
  0xfa   : > { %p3784_p3 = pneg %p3783_p4 }
  0xfc   : > { %p3789_p12 = pnand %p3787_p9, %p3784_p3 }
  0xfe   : > { %3792 = shalt.err (!%p3789_p12)
}
  0xff   : > { %s3793_s13 = scalar_lea.vmem %s650_s16, 128  ;;  %p3801_p1 = scmp.lt.s32.totalorder %s650_s16, %s650_s16 }
 0x100   : > { %p3794_p13 = scmp.ne.s32.totalorder %s650_s16, %s3793_s13  ;;  %p3802_p10 = scmp.lt.s32.totalorder %s3793_s13, %s3793_s13 }
 0x102   : > { %p3796_p7 = pnand %p3794_p13, %p4753_p8  ;;  %p3803_p0 = por %p3802_p10, %p3801_p1 }
 0x104   : > { %p3797_p11 = pneg %p3796_p7 }
 0x106   : > { %p3804_p5 = pnand %p3803_p0, %p3797_p11 }
 0x108   : > { %3807 = shalt.err (!%p3804_p5)
}
 0x109   : > { %3483 = dma.hbm_to_vmem [thread:$0]  (!%p4761_p6), %s4663_s8, 128, %s650_s16, [#allocation12]  }
 0x10a   : > { %s3808_s27 = scalar_lea.hbm %s4360_s17, 1024  ;;  %p4763_p2 = scmp.ne.s32.totalorder %s4749_s20, 0 }
 0x10b   : > { %p3809_p8 = scmp.ne.s32.totalorder %s4360_s17, %s3808_s27  ;;  %s3813_s4 = scalar_lea.hbm %s4673_s18, 2048 }
 0x10c   : > { %p3814_p5 = scmp.lt.u32.totalorder %s4360_s17, %s4673_s18  ;;  %p3815_p9 = scmp.lt.u32.totalorder %s3813_s4, %s3808_s27 }
 0x10d   : > { %p3811_p4 = pnand %p3809_p8, %p4763_p2  ;;  %p3817_p13 = scmp.lt.u32.totalorder %s3808_s27, %s4360_s17 }
 0x10e   : > { %p3816_p12 = por %p3815_p9, %p3814_p5 }
 0x10f   : > { %p3812_p3 = pneg %p3811_p4 }
 0x110   : > { %p3818_p7 = por %p3817_p13, %p3816_p12 }
 0x112   : > { %p3819_p6 = pnand %p3818_p7, %p3812_p3 }
 0x114   : > { %3822 = shalt.err (!%p3819_p6)
}
 0x115   : > { %s3823_s16 = scalar_lea.vmem %s4381_s19, 1024  ;;  %s3948_s24 = smov [#allocation15]  }
 0x116   : > { %p3824_p11 = scmp.ne.s32.totalorder %s4381_s19, %s3823_s16  ;;  %s3828_s11 = sshll.u32 %s3948_s24, 4  ;;  %s3829_s11 = int_to_ptr.vmem [resolvable:$false] %s3828_s11 }
 0x117   : > { %s3830_s5 = scalar_lea.vmem %s3829_s11, 2048  ;;  %p3831_p0 = scmp.lt.s32.totalorder %s4381_s19, %s3829_s11 }
 0x118   : > { %p3826_p1 = pnand %p3824_p11, %p4763_p2  ;;  %p3832_p8 = scmp.lt.s32.totalorder %s3830_s5, %s3823_s16 }
 0x11a   : > { %p3827_p10 = pneg %p3826_p1  ;;  %p3833_p4 = por %p3832_p8, %p3831_p0 }
 0x11c   : > { %p3834_p5 = pnand %p3833_p4, %p3827_p10 }
 0x11e   : > { %3837 = shalt.err (!%p3834_p5)
}
 0x11f   : > { %p4764_p3 = scmp.ne.s32.totalorder %s4747_s21, 0  ;;  %p4765_p2 = scmp.ne.s32.totalorder %s4734_s26, 0 }
 0x120   : > { %p4766_p9 = scmp.eq.s32.totalorder (!%p4765_p2), %s4090_s3, 0 }
 0x121   : > { %3493 = dma.hbm_to_vmem [thread:$0]  (!%p4764_p3), %s4360_s17, 1024, %s4381_s19, %s4190_s9, %s4751_s30, %s4751_s30, %s4750_s7  }
 0x122   : > { %772 = sbr.rel (%p4765_p2) target bundleno = 2793 (0xae9), region = 100 }
 0x129   : > { %3891 = dma.done.wait (%p4766_p9), [#allocation3], 512   ;;  %p4767_p12 = pmov %p4766_p9 }
 0x12a   : > { %p4768_p13 = pmov %p4766_p9 }
 0x12b   : > { %3893 = vsyncadd (%p4767_p12), [#allocation3], 4294966784 }
 0x12c   : > { %3895 = dma.done.wait (%p4768_p13), [#allocation6], 512   ;;  %p4769_p7 = pmov %p4766_p9 }
 0x12e   : > { %3897 = vsyncadd (%p4769_p7), [#allocation6], 4294966784  ;;  %p4770_p6 = pmov %p4769_p7 }
 0x130   : > { %3899 = dma.done.wait (%p4770_p6), [#allocation9], 512   ;;  %p4771_p11 = pmov %p4770_p6 }
 0x131   : > { %p4772_p1 = pmov %p4770_p6 }
 0x132   : > { %3901 = vsyncadd (%p4771_p11), [#allocation9], 4294966784 }
 0x133   : > { %3903 = dma.done.wait (%p4772_p1), [#allocation12], 128   ;;  %p4773_p10 = pmov %p4772_p1 }
 0x134   : > { %s798_s26 = sand.u32 1, %s4090_s3   ;;  %s4428_s9 = sand.u32 1, %s3920_s22  }
 0x135   : > { %3905 = vsyncadd (%p4773_p10), [#allocation12], 4294967168  ;;  %s3431_s21 = smul.u32 192, %s4428_s9  ;;  %s799_s20 = scalar_lea.sflag [#allocation3], %s798_s26 }
 0x136   : > { %p4774_p0 = scmp.ne.s32.totalorder %s4741_s28, 0 }
 0x137   : > { %s4431_s7 = scalar_lea.vmem [#allocation13], %s3431_s21 }
 0x138   : > { %3907 = dma.done.wait (%p4774_p0), %s799_s20, 5120  }
 0x139   : > { %3909 = vsyncadd (%p4774_p0), %s799_s20, 4294962176  ;;  %s4775_s30 = sld [smem:[#allocation24_spill]]  ;;  %vm959_vm0 = vcmask 261120   ;;  %s4776_s12 = sld [smem:[#allocation30_spill]]  ;;  %v951_v7 = vld [vmem:[#allocation2] sm:$0xff]  ;;  %vm1170_vm1 = vcmask 1043456  }
 0x13a   : > { %s4777_s0 = sld [smem:[#allocation31_spill]]  ;;  %s4778_s24 = sld [smem:[#allocation38_spill]]  ;;  %3114 = vmatprep.mubr.msk.f32.mxu1 %vm959_vm0, %v951_v7  ;;  %v952_v10 = vld [vmem:[#allocation2 + $0x8] sm:$0xff]  ;;  %v953_v12 = vld [vmem:[#allocation2 + $0x10] sm:$0xff]  ;;  %v954_v15 = vld [vmem:[#allocation2 + $0x18] sm:$0xff]  ;;  %vm1157_vm2 = vcmask 31744  }
 0x13b   : > { %v955_v25 = vld [vmem:[#allocation5] sm:$0xff]  ;;  %v2944_v26 = vld [vmem:[%s4431_s7 + $0x40] sm:$0xff]  ;;  %v2945_v27 = vld [vmem:[%s4431_s7 + $0x48] sm:$0xff]  ;;  %s4779_s14 = sld [smem:[#allocation39_spill]]  ;;  %vm1650_vm3 = vcmask 130048   ;;  %vm1830_vm4 = vcmask 523264  }
 0x13c   : > { %v3339_v28 = vpack.c.bf16 %v2945_v27, %v2944_v26  ;;  %v956_v44 = vld [vmem:[#allocation5 + $0x8] sm:$0xff]  ;;  %v957_v45 = vld [vmem:[#allocation7] sm:$0xff]  ;;  %v958_v46 = vld [vmem:[#allocation7 + $0x8] sm:$0xff]  ;;  %vm3950_vm5 = vmmov 0   ;;  %s4780_s28 = sld [smem:[#allocation41_spill]]  ;;  %s2906_s25 = sshll.u32 %s4428_s9, 6 }
 0x13d   : > { %v2946_v47 = vld [vmem:[%s4431_s7 + $0x50] sm:$0xff]  ;;  %v2947_v48 = vld [vmem:[%s4431_s7 + $0x58] sm:$0xff]  ;;  %v2948_v50 = vld [vmem:[%s4431_s7 + $0x60] sm:$0xff]  ;;  %s4781_s16 = sld [smem:[#allocation36_spill]]  ;;  %s4782_s26 = sld [smem:[#allocation43_spill]]  ;;  %vm2351_vm6 = vcmask 7168  }
 0x13e   : > { %v3343_v49 = vpack.c.bf16 %v2947_v48, %v2946_v47  ;;  %v2949_v51 = vld [vmem:[%s4431_s7 + $0x68] sm:$0xff]  ;;  %v2950_v53 = vld [vmem:[%s4431_s7 + $0x70] sm:$0xff]  ;;  %v2951_v54 = vld [vmem:[%s4431_s7 + $0x78] sm:$0xff]  ;;  %s4783_s19 = sld [smem:[#allocation44_spill]]  ;;  %vm2368_vm7 = vcmask 64512   ;;  %s820_s4 = scalar_lea.vmem [#allocation15], %s2906_s25 }
 0x13f   : > { %p920_p8 = scmp.lt.s32.totalorder %s4775_s30, 1  ;;  %v943_v0 = vld [vmem:[%s4776_s12] sm:$0xff]  ;;  %v944_v1 = vld [vmem:[%s4776_s12 + $0x8] sm:$0xff]  ;;  %v945_v2 = vld [vmem:[%s4776_s12 + $0x10] sm:$0xff]  ;;  %v3347_v52 = vpack.c.bf16 %v2949_v51, %v2948_v50  ;;  %v3351_v55 = vpack.c.bf16 %v2951_v54, %v2950_v53  ;;  %s2908_s1 = sshll.u32 %s4428_s9, 1 }
 0x140   : > { %v3299_v3 = vpack.c.bf16 %v944_v1, %v943_v0  ;;  %v946_v4 = vld [vmem:[%s4776_s12 + $0x18] sm:$0xff]  ;;  %v947_v5 = vld [vmem:[%s4777_s0] sm:$0xff]  ;;  %v948_v9 = vld [vmem:[%s4777_s0 + $0x8] sm:$0xff] }
 0x141   : > { %s4439_s17 = scalar_select %p920_p8, %s4775_s30, 1  ;;  %v3303_v6 = vpack.c.bf16 %v946_v4, %v945_v2  ;;  %3100 = vmatprep.mubr.msk.f32.mxu0 %vm959_vm0, %v947_v5  ;;  %v949_v11 = vld [vmem:[%s4777_s0 + $0x10] sm:$0xff]  ;;  %v950_v14 = vld [vmem:[%s4777_s0 + $0x18] sm:$0xff]  ;;  %v1644_v56 = vld [vmem:[#allocation8] sm:$0xff] }
 0x142   : > { %3300 = vmatprep.subr.bf16.mxu0 %v3299_v3  ;;  %3308 = vmatprep.subr.bf16.mxu1 %v3299_v3  ;;  %v1813_v57 = vld [vmem:[%s4431_s7] sm:$0xff]  ;;  %v1814_v58 = vld [vmem:[%s4431_s7 + $0x8] sm:$0xff]  ;;  %v1815_v63 = vld [vmem:[%s4431_s7 + $0x10] sm:$0xff] }
 0x143   : > { %s3432_s3 = smul.u32 12, %s4439_s17  ;;  %3302 = vmatpush3.bf16.msra.mxu0 %v3299_v3  ;;  %3310 = vmatpush3.bf16.msra.mxu1 %v3299_v3  ;;  %s927_s15 = scalar_lea.vmem %s4779_s14, %s4439_s17  ;;  %v3355_v59 = vpack.c.bf16 %v1814_v58, %v1813_v57  ;;  %v1818_v7 = vld [vmem:[%s4431_s7 + $0x28] sm:$0xff] }
 0x144   : > { %3304 = vmatprep.subr.bf16.mxu0 %v3303_v6  ;;  %3312 = vmatprep.subr.bf16.mxu1 %v3303_v6  ;;  %v2935_v29 = vld [vmem:[%s927_s15] ss:$0 sm:$0xff]  ;;  %s930_s29 = scalar_lea.vmem %s4780_s28, %s4439_s17  ;;  %s933_s21 = scalar_lea.vmem %s4782_s26, %s4439_s17 }
 0x145   : > { %s4461_s11 = scalar_lea.vmem %s4778_s24, %s3432_s3  ;;  %s811_s24 = scalar_lea.vmem [#allocation14], %s2906_s25 }
 0x146   : > { %v2918_v8 = vld [vmem:[%s4461_s11 + $0x4] sm:$0xf]  ;;  %v1154_v13 = vld [vmem:[%s4461_s11] sm:$0xf]  ;;  %v2929_v16 = vld [vmem:[%s4461_s11 + $0x8] sm:$0xf]  ;;  %s936_s10 = scalar_lea.vmem %s4783_s19, %s4439_s17 }
 0x147   : > { %3306 = vmatpush3.bf16.msra.mxu0 %v3303_v6  ;;  %3314 = vmatpush3.bf16.msra.mxu1 %v3303_v6  ;;  %v1817_v6 = vld [vmem:[%s4431_s7 + $0x20] sm:$0xff]  ;;  %v2247_v47 = vld [vmem:[%s811_s24 + $0x18] sm:$0xff]  ;;  %v2249_v50 = vld [vmem:[%s811_s24 + $0x28] sm:$0xff]  ;;  %s4784_s15 = sld [smem:[#allocation45_spill]]  ;;  %s4787_s11 = sld [smem:[#allocation46_spill]] }
 0x148   : > { %3120 = vmatprep.subr.msk.mxu0 %vm1170_vm1, %v2918_v8  ;;  %v2251_v53 = vld [vmem:[%s811_s24 + $0x38] sm:$0xff]  ;;  %s4786_s25 = sld [smem:[#allocation27_spill]]  ;;  %s2978_s26 = sshll.u32 %s4775_s30, 5 }
 0x149   : > { %s2610_s14 = scalar_lea.sflag [#allocation4], %s4428_s9  ;;  %s3953_s30 = smov [#allocation16]  }
 0x14a   : > { %3101 = vmatmul.mubr.msk.f32.vlgmr.msra.gmra.mrb[0].mxu0 %vm959_vm0, %v948_v9  ;;  %3115 = vmatmul.mubr.msk.f32.vlgmr.msra.gmra.mrb[0].mxu1 %vm959_vm0, %v952_v10  ;;  %v1646_v9 = vld [vmem:[#allocation10] sm:$0xff]  ;;  %v3363_v10 = vpack.c.bf16 %v1818_v7, %v1817_v6 }
 0x14b   : > { %3103 = vmatprep.mubr.msk.f32.mxu0 %vm959_vm0, %v949_v11  ;;  %3117 = vmatprep.mubr.msk.f32.mxu1 %vm959_vm0, %v953_v12  ;;  %v1819_v11 = vld [vmem:[%s4431_s7 + $0x30] sm:$0xff]  ;;  %v1820_v12 = vld [vmem:[%s4431_s7 + $0x38] sm:$0xff] }
 0x14c   : > { %3121 = vmatpush3.msk.msra.mxu0 %vm1170_vm1, %v2918_v8  ;;  %v1645_v8 = vld [vmem:[#allocation8 + $0x8] sm:$0xff] }
 0x14d   : > { %3128 = vmatprep.subr.msk.mxu0 %vm1170_vm1, %v1154_v13  ;;  %s942_s5 = scalar_lea.vmem %s4787_s11, %s4439_s17 }
 0x14e   : > { %3104 = vmatmul.mubr.msk.f32.gmra.mrb[2].mxu0 %vm959_vm0, %v950_v14  ;;  %3118 = vmatmul.mubr.msk.f32.gmra.mrb[2].mxu1 %vm959_vm0, %v954_v15  ;;  %v3367_v14 = vpack.c.bf16 %v1820_v12, %v1819_v11  ;;  %v2956_v15 = vld [vmem:[%s4431_s7 + $0x80] sm:$0xff]  ;;  %p4789_p5 = scmp.ne.s32.totalorder %s4786_s25, 0 }
 0x14f   : > { %3122 = vmatprep.mubr.msk.f32.mxu0 %vm1157_vm2, %v943_v0  ;;  %3152 = vmatprep.mubr.msk.f32.mxu1 %vm959_vm0, %v955_v25  ;;  %v1816_v0 = vld [vmem:[%s4431_s7 + $0x18] sm:$0xff] }
 0x152   : > { %3123 = vmatmul.mubr.msk.f32.vlgmr.msra.gmra.mrb[4].mxu0 %vm1157_vm2, %v944_v1 }
 0x153   : > { %3125 = vmatprep.mubr.msk.f32.mxu0 %vm1157_vm2, %v945_v2  ;;  %3129 = vmatpush3.msk.msra.mxu0 %vm1170_vm1, %v1154_v13  ;;  %v1647_v13 = vld [vmem:[#allocation10 + $0x8] sm:$0xff] }
 0x154   : > { %3136 = vmatprep.subr.msk.mxu0 %vm1170_vm1, %v2929_v16 }
 0x156   : > { %3126 = vmatmul.mubr.msk.f32.gmra.mrb[6].mxu0 %vm1157_vm2, %v946_v4  ;;  %v3359_v4 = vpack.c.bf16 %v1816_v0, %v1815_v63  ;;  %v2971_v0 = vld [vmem:[%s936_s10] ss:$0 sm:$0xff]  ;;  %s4788_s10 = sld [smem:[#allocation47_spill]] }
 0x15c   : > { %s4606_s13 = scalar_lea.hbm %s4788_s10, %s2978_s26 }
 0x21d   : > { %v3102_v17 = vpop.f32.mrb[0].mxu0  ;;  %v3116_v18 = vpop.f32.mrb[0].mxu1 }
 0x21e   : > { %v1038_v19 = vpop.f32.mrb[1].mxu0  ;;  %v1135_v20 = vpop.f32.mrb[1].mxu1 }
 0x21f   : > { %3130 = vmatprep.mubr.msk.f32.mxu0 %vm1157_vm2, %v1038_v19  ;;  %v2959_v19 = vld [vmem:[%s4431_s7 + $0x98] sm:$0xff] }
 0x220   : > { %3131 = vmatmul.mubr.msk.f32.vlgmr.msra.gmra.mrb[4].mxu0 %vm1157_vm2, %v3102_v17 }
 0x221   : > { %v3105_v21 = vpop.f32.mrb[2].mxu0  ;;  %3137 = vmatpush3.msk.msra.mxu0 %vm1170_vm1, %v2929_v16  ;;  %v3119_v22 = vpop.f32.mrb[2].mxu1  ;;  %v2957_v16 = vld [vmem:[%s4431_s7 + $0x88] sm:$0xff] }
 0x222   : > { %v1048_v23 = vpop.f32.mrb[3].mxu0  ;;  %v1145_v24 = vpop.f32.mrb[3].mxu1  ;;  %3340 = vmatprep.subr.bf16.mxu0 %v3339_v28  ;;  %v3371_v17 = vpack.c.bf16 %v2957_v16, %v2956_v15 }
 0x223   : > { %3133 = vmatprep.mubr.msk.f32.mxu0 %vm1157_vm2, %v1048_v23  ;;  %v2960_v23 = vld [vmem:[%s4431_s7 + $0xa0] sm:$0xff] }
 0x224   : > { %3134 = vmatmul.mubr.msk.f32.gmra.mrb[6].mxu0 %vm1157_vm2, %v3105_v21 }
 0x225   : > { %3138 = vmatprep.mubr.msk.f32.mxu0 %vm1157_vm2, %v1135_v20 }
 0x228   : > { %3139 = vmatmul.mubr.msk.f32.vlgmr.msra.gmra.mrb[4].mxu0 %vm1157_vm2, %v3116_v18  ;;  %v2958_v18 = vld [vmem:[%s4431_s7 + $0x90] sm:$0xff] }
 0x229   : > { %3141 = vmatprep.mubr.msk.f32.mxu0 %vm1157_vm2, %v1145_v24  ;;  %3342 = vmatpush3.bf16.msra.mxu0 %v3339_v28  ;;  %v2961_v24 = vld [vmem:[%s4431_s7 + $0xa8] sm:$0xff]  ;;  %v2962_v28 = vld [vmem:[%s4431_s7 + $0xb0] sm:$0xff] }
 0x22a   : > { %3344 = vmatprep.subr.bf16.mxu0 %v3343_v49  ;;  %v3379_v26 = vpack.c.bf16 %v2961_v24, %v2960_v23  ;;  %v2523_v24 = vld [vmem:[%s820_s4 + $0x18] sm:$0xff] }
 0x22c   : > { %3142 = vmatmul.mubr.msk.f32.gmra.mrb[6].mxu0 %vm1157_vm2, %v3119_v22  ;;  %v3375_v22 = vpack.c.bf16 %v2959_v19, %v2958_v18 }
 0x22d   : > { %3346 = vmatpush3.bf16.msra.mxu0 %v3343_v49  ;;  %v2248_v49 = vld [vmem:[%s811_s24 + $0x20] sm:$0xff] }
 0x22e   : > { %3348 = vmatprep.subr.bf16.mxu0 %v3347_v52  ;;  %v3400_v51 = vpack.c.bf16 %v2249_v50, %v2248_v49 }
 0x231   : > { %3350 = vmatpush3.bf16.msra.mxu0 %v3347_v52  ;;  %v2250_v52 = vld [vmem:[%s811_s24 + $0x30] sm:$0xff] }
 0x232   : > { %3352 = vmatprep.subr.bf16.mxu0 %v3351_v55  ;;  %v3403_v54 = vpack.c.bf16 %v2251_v53, %v2250_v52 }
 0x235   : > { %3354 = vmatpush3.bf16.msra.mxu0 %v3351_v55 }
 0x236   : > { %3356 = vmatprep.subr.bf16.mxu0 %v3355_v59 }
 0x2fb   : > { %v3140_v30 = vpop.f32.mrb[4].mxu0 }
 0x2fc   : > { %v1473_v31 = vadd.f32 %v3140_v30, %v2935_v29  ;;  %v1442_v32 = vpop.f32.mrb[5].mxu0 }
 0x2fd   : > { %v1472_v33 = vadd.f32 %v2935_v29, %v1442_v32  ;;  %v3951_v32 = vmov 0.0  }
 0x2fe   : > { %v1477_v34 = vmax.f32 %v1473_v31, 0.0  ;;  %v3949_v31 = vmov 0.0|0.0  }
 0x2ff   : > { %v1476_v35 = vmax.f32 %v1472_v33, 0.0  ;;  %v3143_v36 = vpop.f32.mrb[6].mxu0  ;;  %v2966_v33 = vld [vmem:[%s930_s29] ss:$0 sm:$0xff]  ;;  %s4785_s29 = sld [smem:[#allocation37_spill]] }
 0x300   : > { %v1475_v37 = vadd.f32 %v3143_v36, %v2935_v29  ;;  %v1452_v38 = vpop.f32.mrb[7].mxu0 }
 0x301   : > { %v3315_v39 = vpack.c.bf16 %v1477_v34, %v1476_v35  ;;  %v1474_v40 = vadd.f32 %v2935_v29, %v1452_v38  ;;  %v2963_v29 = vld [vmem:[%s4431_s7 + $0xb8] sm:$0xff]  ;;  %s939_s7 = scalar_lea.vmem %s4784_s15, %s4439_s17  ;;  %s3842_s15 = sshll.u32 %s3953_s30, 4  ;;  %s3843_s15 = int_to_ptr.vmem [resolvable:$false] %s3842_s15 }
 0x302   : > { %v1479_v41 = vmax.f32 %v1475_v37, 0.0  ;;  %v3383_v30 = vpack.c.bf16 %v2963_v29, %v2962_v28  ;;  %v2526_v29 = vld [vmem:[%s820_s4 + $0x30] sm:$0xff] }
 0x303   : > { %v1478_v42 = vmax.f32 %v1474_v40, 0.0  ;;  %3316 = vmatprep.subr.bf16.mxu1 %v3315_v39 }
 0x304   : > { %3318 = vmatpush3.bf16.msra.mxu1 %v3315_v39 }
 0x305   : > { %v3319_v43 = vpack.c.bf16 %v1479_v41, %v1478_v42  ;;  %v1648_v41 = vld [vmem:[%s4781_s16] sm:$0xff]  ;;  %v2244_v42 = vld [vmem:[%s811_s24] sm:$0xff] }
 0x306   : > { %v2243_v19 = vld [vmem:[%s4785_s29] sm:$0x3] }
 0x307   : > { %3320 = vmatprep.subr.bf16.mxu1 %v3319_v43 }
 0x308   : > { %3322 = vmatpush3.bf16.msra.mxu1 %v3319_v43 }
 0x309   : > { %3324 = vmatprep.subr.bf16.mxu1 %v3315_v39 }
 0x30b   : > { %3153 = vmatmul.mubr.msk.f32.vlgmr.msra.gmra.mrb[4].mxu1 %vm959_vm0, %v956_v44  ;;  %v1649_v44 = vld [vmem:[#allocation11] sm:$0xff] }
 0x30c   : > { %3326 = vmatpush3.bf16.msra.mxu1 %v3315_v39  ;;  %3163 = vmatprep.mubr.msk.f32.mxu1 %vm959_vm0, %v957_v45 }
 0x30d   : > { %3328 = vmatprep.subr.bf16.mxu1 %v3319_v43 }
 0x310   : > { %3330 = vmatpush3.bf16.msra.mxu1 %v3319_v43  ;;  %v2245_v43 = vld [vmem:[%s811_s24 + $0x8] sm:$0xff] }
 0x311   : > { %v3394_v45 = vpack.c.bf16 %v2245_v43, %v2244_v42 }
 0x313   : > { %3164 = vmatmul.mubr.msk.f32.vlgmr.msra.gmra.mrb[6].mxu1 %vm959_vm0, %v958_v46  ;;  %v2246_v46 = vld [vmem:[%s811_s24 + $0x10] sm:$0xff] }
 0x314   : > { %3170 = vmatprep.mubr.msk.f32.mxu1 %vm1650_vm3, %v1644_v56  ;;  %v3397_v48 = vpack.c.bf16 %v2247_v47, %v2246_v46 }
 0x3de   : > { %v3154_v60 = vpop.f32.mrb[4].mxu1 }
 0x3df   : > { %v1552_v61 = vpop.f32.mrb[5].mxu1 }
 0x3e6   : > { %v3165_v62 = vpop.f32.mrb[6].mxu1 }
 0x3e7   : > { %v1643_v1 = vmax.f32 %v3154_v60, %v3165_v62  ;;  %v1633_v2 = vpop.f32.mrb[7].mxu1  ;;  %v2969_v60 = vld [vmem:[%s933_s21] ss:$0 sm:$0xff]  ;;  %s914_s21 = scalar_lea.vmem [#allocation16], %s2908_s1 }
 0x3e8   : > { %v1642_v3 = vmax.f32 %v1552_v61, %v1633_v2  ;;  %s2624_s20 = sshll.u32 %s914_s21, 4  ;;  %s4608_s20 = int_to_ptr.vmem [resolvable:$true] %s2624_s20 }
 0x3e9   : > { %s3838_s17 = scalar_lea.vmem %s4608_s20, 32  ;;  %p3845_p9 = scmp.lt.s32.totalorder %s4608_s20, %s3843_s15 }
 0x3ea   : > { %v3331_v5 = vpack.c.bf16 %v1643_v1, %v1642_v3  ;;  %3196 = vmatprep.mubr.msk.f32.mxu0 %vm1830_vm4, %v1642_v3  ;;  %v3952_v3 = vmov 0   ;;  %p3839_p4 = scmp.ne.s32.totalorder %s4608_s20, %s3838_s17 }
 0x3eb   : > { %3197 = vmatmul.mubr.msk.f32.vlgmr.msra.gmra.mrb[8].mxu0 %vm1830_vm4, %v1643_v1  ;;  %3572 = vset.pattern.permute.xlu0 %v3952_v3 }
 0x3ec   : > { %3332 = vmatprep.subr.bf16.mxu1 %v3331_v5  ;;  %3358 = vmatpush3.bf16.msra.mxu0 %v3355_v59  ;;  %p3840_p3 = pnand %p3839_p4, %p4789_p5 }
 0x3ed   : > { %3334 = vmatpush3.bf16.msra.mxu1 %v3331_v5  ;;  %3360 = vmatprep.subr.bf16.mxu0 %v3359_v4 }
 0x3ee   : > { %3336 = vmatprep.subr.bf16.mxu1 %v3331_v5  ;;  %3573 = vset.pattern.permute.xlu1 %v3952_v3  ;;  %p3841_p2 = pneg %p3840_p3 }
 0x3f0   : > { %3171 = vmatmul.mubr.msk.f32.vlgmr.msra.gmra.mrb[8].mxu1 %vm1650_vm3, %v1645_v8  ;;  %3362 = vmatpush3.bf16.msra.mxu0 %v3359_v4  ;;  %v2972_v4 = vld [vmem:[%s939_s7] ss:$0 sm:$0xff]  ;;  %s3844_s7 = scalar_lea.vmem %s3843_s15, 64 }
 0x3f1   : > { %3338 = vmatpush3.bf16.msra.mxu1 %v3331_v5  ;;  %3177 = vmatprep.mubr.msk.f32.mxu1 %vm1650_vm3, %v1646_v9  ;;  %p3846_p12 = scmp.lt.s32.totalorder %s3844_s7, %s3838_s17 }
 0x3f2   : > { %3364 = vmatprep.subr.bf16.mxu0 %v3363_v10  ;;  %3387 = vmatprep.subr.bf16.mxu1 %v3949_v31 }
 0x3f3   : > { %p3847_p13 = por %p3846_p12, %p3845_p9 }
 0x3f4   : > { %3178 = vmatmul.mubr.msk.f32.vlgmr.msra.gmra.mrb[10].mxu1 %vm1650_vm3, %v1647_v13  ;;  %3366 = vmatpush3.bf16.msra.mxu0 %v3363_v10 }
 0x3f5   : > { %3368 = vmatprep.subr.bf16.mxu0 %v3367_v14  ;;  %3241 = vmatprep.mubr.msk.f32.mxu1 %vm3950_vm5, %v3951_v32  ;;  %p3848_p7 = pnand %p3847_p13, %p3841_p2 }
 0x3f8   : > { %3370 = vmatpush3.bf16.msra.mxu0 %v3367_v14 }
 0x3f9   : > { %3372 = vmatprep.subr.bf16.mxu0 %v3371_v17 }
 0x4c3   : > { %v3172_v20 = vpop.f32.mrb[8].mxu1 }
 0x4c4   : > { %v1723_v21 = vpop.f32.mrb[9].mxu1 }
 0x4c5   : > { %3215 = vmatprep.mubr.msk.f32.mxu0 %vm1830_vm4, %v1723_v21  ;;  %v2521_v21 = vld [vmem:[%s820_s4 + $0x8] sm:$0xff] }
 0x4c6   : > { %3216 = vmatmul.mubr.msk.f32.vlgmr.msra.gmra.mrb[8].mxu0 %vm1830_vm4, %v3172_v20  ;;  %v2520_v20 = vld [vmem:[%s820_s4] sm:$0xff] }
 0x4c7   : > { %3374 = vmatpush3.bf16.msra.mxu0 %v3371_v17  ;;  %v3179_v25 = vpop.f32.mrb[10].mxu1  ;;  %v3406_v23 = vpack.c.bf16 %v2521_v21, %v2520_v20 }
 0x4c8   : > { %3376 = vmatprep.subr.bf16.mxu0 %v3375_v22  ;;  %v1804_v27 = vpop.f32.mrb[11].mxu1 }
 0x4c9   : > { %3234 = vmatprep.mubr.msk.f32.mxu0 %vm1830_vm4, %v1804_v27  ;;  %v2525_v27 = vld [vmem:[%s820_s4 + $0x28] sm:$0xff] }
 0x4cb   : > { %3378 = vmatpush3.bf16.msra.mxu0 %v3375_v22  ;;  %v2522_v22 = vld [vmem:[%s820_s4 + $0x10] sm:$0xff] }
 0x4cc   : > { %3380 = vmatprep.subr.bf16.mxu0 %v3379_v26 }
 0x4cf   : > { %3382 = vmatpush3.bf16.msra.mxu0 %v3379_v26  ;;  %v2524_v26 = vld [vmem:[%s820_s4 + $0x20] sm:$0xff] }
 0x4d0   : > { %3384 = vmatprep.subr.bf16.mxu0 %v3383_v30  ;;  %v3412_v28 = vpack.c.bf16 %v2525_v27, %v2524_v26 }
 0x4d3   : > { %3386 = vmatpush3.bf16.msra.mxu0 %v3383_v30  ;;  %v2527_v30 = vld [vmem:[%s820_s4 + $0x38] sm:$0xff] }
 0x4d6   : > { %3235 = vmatmul.mubr.msk.f32.vlgmr.msra.gmra.mrb[8].mxu0 %vm1830_vm4, %v3179_v25  ;;  %v3409_v25 = vpack.c.bf16 %v2523_v24, %v2522_v22 }
 0x5a9   : > { %v3236_v34 = vpop.f32.mrb[8].mxu0 }
 0x5aa   : > { %v2093_v35 = vadd.f32 %v3236_v34, %v2966_v33  ;;  %v2074_v36 = vpop.f32.mrb[9].mxu0 }
 0x5ab   : > { %v2092_v37 = vadd.f32 %v2966_v33, %v2074_v36 }
 0x5ac   : > { %v2095_v38 = vmax.f32 %v2093_v35, 0.0 }
 0x5ad   : > { %v2094_v39 = vmax.f32 %v2092_v37, 0.0 }
 0x5af   : > { %v3388_v40 = vpack.c.bf16 %v2095_v38, %v2094_v39 }
 0x5b1   : > { %3389 = vmatpush3.bf16.msra.mxu1 %v3388_v40 }
 0x5b2   : > { %3390 = vmatprep.subr.bf16.mxu1 %v3949_v31 }
 0x5b4   : > { %3242 = vmatmul.mubr.msk.f32.vlgmr.msra.gmra.mrb[12].mxu1 %vm1650_vm3, %v1648_v41 }
 0x5b5   : > { %3392 = vmatpush3.bf16.msra.mxu1 %v3388_v40  ;;  %3248 = vmatprep.mubr.msk.f32.mxu1 %vm3950_vm5, %v3951_v32 }
 0x5b6   : > { %3393 = vmatprep.subr.bf16.mxu1 %v3949_v31 }
 0x5b8   : > { %3249 = vmatmul.mubr.msk.f32.vlgmr.msra.gmra.mrb[14].mxu1 %vm1650_vm3, %v1649_v44 }
 0x5b9   : > { %3395 = vmatpush3.bf16.msra.mxu1 %v3394_v45  ;;  %3267 = vmatprep.mubr.msk.f32.mxu1 %vm3950_vm5, %v3951_v32 }
 0x5ba   : > { %3396 = vmatprep.subr.bf16.mxu1 %v3949_v31 }
 0x5bd   : > { %3398 = vmatpush3.bf16.msra.mxu1 %v3397_v48 }
 0x5be   : > { %3399 = vmatprep.subr.bf16.mxu1 %v3949_v31 }
 0x5c1   : > { %3401 = vmatpush3.bf16.msra.mxu1 %v3400_v51 }
 0x5c2   : > { %3402 = vmatprep.subr.bf16.mxu1 %v3949_v31 }
 0x5c5   : > { %3404 = vmatpush3.bf16.msra.mxu1 %v3403_v54 }
 0x5c6   : > { %3270 = vmatprep.subr.mxu1 %v3951_v32 }
 0x687   : > { %v2165_v55 = vpop.f32.mrb[12].mxu1 }
 0x688   : > { %v3243_v56 = vpop.f32.mrb[13].mxu1 }
 0x68b   : > { %v2238_v57 = vpop.f32.mrb[14].mxu1 }
 0x68c   : > { %v2242_v58 = vmax.f32 %v2165_v55, %v2238_v57  ;;  %v3250_v59 = vpop.f32.mrb[15].mxu1 }
 0x68e   : > { %3268 = vmatmul.mubr.msk.f32.vlgmr.msra.gmra.mrb[16].mxu1 %vm1830_vm4, %v2242_v58 }
 0x68f   : > { %3272 = vmatprep.mubr.msk.f32.mxu1 %vm3950_vm5, %v3951_v32 }
 0x761   : > { %v2328_v61 = vpop.f32.mrb[16].mxu1 }
 0x762   : > { %v2329_v62 = vadd.f32 %v2969_v60, %v2328_v61  ;;  %v3269_v63 = vpop.f32.mrb[17].mxu1 }
 0x764   : > { %3574 = vtanh.f32 %v2329_v62 }
 0x76e   : > { %v3575_v1 = vpop.eup %3574 }
 0x76f   : > { %v2340_v2 = vmul.f32 %v3575_v1, %v2971_v0 }
 0x771   : > { %2341 = vadd.xlane.f32.xlu0 %v2340_v2 }
 0x7fe   : > { %v2342_v5 = vpop.xlane.xlu0 %2341 }
 0x7ff   : > { %v2350_v6 = vadd.f32 %v2972_v4, %v2342_v5 }
 0x801   : > { %v2352_v7 = vsel %vm2351_vm6, %v2350_v6, -inf }
 0x802   : > { %v2353_v8 = vrot.slane %v2352_v7, 4 }
 0x804   : > { %v2354_v9 = vmax.f32 %v2352_v7, %v2353_v8 }
 0x806   : > { %v2355_v10 = vrot.slane %v2354_v9, 2 }
 0x808   : > { %v2356_v11 = vmax.f32 %v2354_v9, %v2355_v10 }
 0x80a   : > { %v2357_v12 = vrot.slane %v2356_v11, 1 }
 0x80c   : > { %v2358_v13 = vmax.f32 %v2356_v11, %v2357_v12 }
 0x80e   : > { %v2359_v14 = vsub.f32 %v2350_v6, %v2358_v13 }
 0x810   : > { %v2360_v15 = vmul.f32 1.442695, %v2359_v14 }
 0x812   : > { %3576 = vpow2.f32 %v2360_v15 }
 0x81c   : > { %v3577_v16 = vpop.eup %3576 }
 0x81d   : > { %2364 = vperm.xlu0 %3572, %v3577_v16  }
 0x89c   : > { %v2365_v17 = vpop.permute.xlu0 %2364 }
 0x89d   : > { %v2367_v18 = vmul.f32 %v2365_v17, %v2242_v58 }
 0x89f   : > { %3271 = vmatpush3.msra.mxu1 %v2367_v18 }
 0x8a0   : > { %3273 = vmatmul.mubr.msk.f32.vlgmr.msra.gmra.mrb[18].mxu1 %vm2368_vm7, %v2243_v19  ;;  %3275 = vmatprep.subr.mxu1 %v3951_v32 }
 0x8a1   : > { %3276 = vmatpush3.msra.mxu1 %v3577_v16  ;;  %3277 = vmatprep.mubr.msk.f32.mxu1 %vm3950_vm5, %v3951_v32 }
 0x8a2   : > { %3405 = vmatprep.subr.bf16.mxu1 %v3949_v31 }
 0x8a4   : > { %3278 = vmatmul.mubr.msk.f32.vlgmr.msra.gmra.mrb[20].mxu1 %vm2368_vm7, %v2243_v19 }
 0x8a5   : > { %3296 = vmatprep.mubr.msk.f32.mxu1 %vm3950_vm5, %v3951_v32  ;;  %3407 = vmatpush3.bf16.msra.mxu1 %v3406_v23  ;;  %v3415_v32 = vpack.c.bf16 %v2527_v30, %v2526_v29 }
 0x8a6   : > { %3408 = vmatprep.subr.bf16.mxu1 %v3949_v31 }
 0x8a9   : > { %3410 = vmatpush3.bf16.msra.mxu1 %v3409_v25 }
 0x8aa   : > { %3411 = vmatprep.subr.bf16.mxu1 %v3949_v31 }
 0x8ad   : > { %3413 = vmatpush3.bf16.msra.mxu1 %v3412_v28 }
 0x8ae   : > { %3414 = vmatprep.subr.bf16.mxu1 %v3949_v31  ;;  %v2975_v31 = vld [vmem:[%s942_s5] ss:$0 sm:$0xff] }
 0x8b1   : > { %3416 = vmatpush3.bf16.msra.mxu1 %v3415_v32 }
 0x973   : > { %v2438_v33 = vpop.f32.mrb[18].mxu1 }
 0x974   : > { %v3274_v34 = vpop.f32.mrb[19].mxu1 }
 0x977   : > { %v2508_v35 = vpop.f32.mrb[20].mxu1 }
 0x978   : > { %3578 = vrcp.f32 %v2508_v35  ;;  %v3279_v36 = vpop.f32.mrb[21].mxu1 }
 0x982   : > { %v3579_v37 = vpop.eup %3578 }
 0x983   : > { %2516 = vperm.xlu1 %3573, %v3579_v37  }
 0xa02   : > { %v2517_v38 = vpop.permute.xlu1 %2516 }
 0xa03   : > { %v2519_v39 = vmul.f32 %v2517_v38, %v2438_v33 }
 0xa05   : > { %3297 = vmatmul.mubr.msk.f32.vlgmr.msra.gmra.mrb[22].mxu1 %vm1830_vm4, %v2519_v39 }
 0xad8   : > { %v2604_v40 = vpop.f32.mrb[22].mxu1 }
 0xad9   : > { %v2605_v41 = vadd.f32 %v2975_v31, %v2604_v40  ;;  %v3298_v42 = vpop.f32.mrb[23].mxu1 }
 0xadb   : > { %2608 = vst [vmem:[%s914_s21] sm:$0x3] %v2605_v41 }
 0xadc   : > { %3851 = shalt.err (!%p3848_p7)
}
 0xadd   : > { %s3852_s9 = scalar_lea.hbm %s4606_s13, 32  ;;  %s3856_s29 = scalar_lea.hbm %s4788_s10, 64 }
 0xade   : > { %p3853_p6 = scmp.ne.s32.totalorder %s4606_s13, %s3852_s9  ;;  %p3857_p10 = scmp.lt.u32.totalorder %s4606_s13, %s4788_s10 }
 0xadf   : > { %p3858_p0 = scmp.lt.u32.totalorder %s3856_s29, %s3852_s9  ;;  %p3860_p4 = scmp.lt.u32.totalorder %s3852_s9, %s4606_s13 }
 0xae0   : > { %p3854_p11 = pnand %p3853_p6, %p4789_p5 }
 0xae1   : > { %p3859_p8 = por %p3858_p0, %p3857_p10 }
 0xae2   : > { %p3855_p1 = pneg %p3854_p11 }
 0xae3   : > { %p3861_p3 = por %p3860_p4, %p3859_p8 }
 0xae5   : > { %p3862_p2 = pnand %p3861_p3, %p3855_p1 }
 0xae7   : > { %3865 = shalt.err (!%p3862_p2)
}
 0xae8   : > { %3463 = dma.vmem_to_hbm [thread:$0]  (%p4789_p5), %s4608_s20, 32, %s4606_s13, %s2610_s14  }
 0xae9 PF: > { %s4790_s16 = sld [smem:[#allocation23_spill]]  ;;  %s4791_s24 = sld [smem:[#allocation29_spill]] }
 0xaea   : > { %s4792_s11 = sld [smem:[#allocation25_spill]] }
 0xaef   : > { %s2636_s5 = sand.u32 1, %s4790_s16   ;;  %p4793_p9 = scmp.ne.s32.totalorder %s4791_s24, 0 }
 0xaf0   : > { %p4794_p12 = scmp.ge.s32.totalorder %s4792_s11, 2  ;;  %s2637_s26 = scalar_lea.sflag [#allocation4], %s2636_s5 }
 0xaf2   : > { %p3495_p13 = pnand %p4794_p12, %p4793_p9 }
 0xaf4   : > { %3911 = dma.done.wait (!%p3495_p13), %s2637_s26, 32  }
 0xaf5   : > { %3913 = vsyncadd (!%p3495_p13), %s2637_s26, 4294967264  ;;  %s37_s25 = sadd.s32 1, %s4792_s11   ;;  %s4795_s21 = sld [smem:[#allocation28_spill]] }
 0xaf6   : > { %p34_p7 = scmp.ge.s32.totalorder %s37_s25, 4   ;;  %s4796_s3 = sld [smem:[#allocation26_spill]] }
 0xaf7   : > { %s4797_s1 = smov %s3920_s22  ;;  %s4798_s22 = smov %s3924_s23 }
 0xaf8   : > { %s4800_s24 = smov %s3932_s2  ;;  %36 = sbr.rel (!%p34_p7) target bundleno = 27 (0x1b), region = 218 }
 0xafb   : > { %s4799_s23 = smov %s4795_s21 }
 0xafc   : > { %s4801_s2 = smov %s4796_s3 }
 0xaff   :  { %2642 = vsyncpa [#allocation3], 1 }
 0xb00   :  { %2644 = vsyncpa [#allocation3 + $0x1], 1 }
 0xb01   :  { %2645 = vsyncpa [#allocation6], 1 }
 0xb02   :  { %2646 = vsyncpa [#allocation9], 1 }
 0xb03   :  { %2647 = vsyncpa [#allocation12], 1 }
 0xb04   :  { %2648 = vsyncpa [#allocation4], 1 }
 0xb05   :  { %2650 = vsyncpa [#allocation4 + $0x1], 1 }

</bundles_post_ra>
